<compile_context>
chip_gen: v7x
topology: tpu7x:2x2x1
jax: 0.10.0
libtpu: 0.0.40
codegen_flags: <defaults>
</compile_context>

<pallas_src>
import functools
from typing import Any, NamedTuple, Tuple

import jax
import jax.numpy as jnp
from jax.experimental import pallas as pl
from jax.experimental.pallas import tpu as pltpu


def _round_up(x, m):
    return ((x + m - 1) // m) * m


def _default_feature_granule():
    """MXU-native feature-dim padding: 256 on v6e/v7x, 128 on v5e and older."""
    try:
        kind = jax.devices()[0].device_kind.lower()
    except Exception:
        return 128
    for tag in ("v2", "v3", "v4", "v5"):
        if tag in kind:
            return 128
    return 256


def _vmem_limit_cap_bytes():
    """Generation-aware VMEM ceiling (~75% of physical capacity)."""
    cap = 64 * 1024 * 1024  # v7x physical VMEM (smallest generation) fallback
    try:
        cap = int(pltpu.get_tpu_info().vmem_capacity_bytes)
    except Exception:
        pass
    return (cap * 3) // 4


def _choose_tiling(n, block_m):
    """Pick (row tile bm, grid steps) with bounded batch padding.

    - bm is a multiple of 128 (8 for tiny batches).
    - When the batch allows, the grid has >= 4 steps (>= 2 per v7x TC) and an
      even number of steps so both TensorCores stay busy.
    """
    if n <= 128:
        return _round_up(max(n, 1), 8), 1
    steps = max(pl.cdiv(n, block_m), min(4, n // 128))
    bm = _round_up(pl.cdiv(n, steps), 128)
    steps = pl.cdiv(n, bm)
    if steps > 1 and steps % 2 == 1:
        steps += 1  # even grid: balances v7x's 2 TensorCores
    return bm, steps


class HThetaParams(NamedTuple):
    weights: Tuple[Any, ...]   # padded, compute_dtype, (in_p, out_p)
    biases: Tuple[Any, ...]    # padded, float32, (1, out_p)
    in_dim: int
    out_dim: int
    in_dim_padded: int
    out_dim_padded: int
    compute_dtype: Any


def prepare_h_theta_params(weights, biases, *, compute_dtype=jnp.bfloat16,
                           feature_granule=None):
    """One-time padding/cast of the parameters (hoisted out of the forward).

    weights[i]: (in_features, out_features) float32
    biases[i]:  (out_features,) or (1, out_features) float32
    Zero-padding of feature dims is mathematically exact for Linear+ReLU.
    """
    if feature_granule is None:
        feature_granule = _default_feature_granule()
    n_linear = len(weights)
    in_dim = weights[0].shape[0]
    out_dim = weights[-1].shape[1]
    in_dim_p = _round_up(in_dim, 8)  # only sublane-pad the input features

    w_p, b_p = [], []
    for li, (w, b) in enumerate(zip(weights, biases)):
        fi, fo = w.shape
        fi_p = in_dim_p if li == 0 else _round_up(fi, feature_granule)
        fo_granule = 128 if li == n_linear - 1 else feature_granule
        fo_p = _round_up(fo, fo_granule)
        wp = jnp.zeros((fi_p, fo_p), compute_dtype).at[:fi, :fo].set(
            w.astype(compute_dtype))
        bp = jnp.zeros((1, fo_p), jnp.float32).at[:, :fo].set(
            jnp.reshape(b, (1, -1)).astype(jnp.float32))
        w_p.append(wp)
        b_p.append(bp)

    return HThetaParams(tuple(w_p), tuple(b_p), in_dim, out_dim,
                        in_dim_p, w_p[-1].shape[1], compute_dtype)


def _mlp_kernel(*refs, n_linear, compute_dtype):
    # refs = (x_ref, w0, b0, w1, b1, ..., wL, bL, o_ref)
    x_ref = refs[0]
    o_ref = refs[-1]
    param_refs = refs[1:-1]
    assert len(param_refs) == 2 * n_linear

    h = x_ref[...].astype(compute_dtype)
    for li in range(n_linear):
        w = param_refs[2 * li][...]
        b = param_refs[2 * li + 1][...]
        # MXU matmul with f32 accumulation; f32 bias added to the accumulator.
        acc = jnp.dot(h, w, preferred_element_type=jnp.float32) + b
        if li < n_linear - 1:          # ReLU on all but the output layer
            h = jnp.maximum(acc, 0.0).astype(compute_dtype)
        else:
            o_ref[...] = acc.astype(o_ref.dtype)


def h_theta_forward(x, params: HThetaParams, *, block_m=1024, out_dtype=None,
                    single_buffer_weights=True):
    """Run the H_theta MLP forward pass with a fused Pallas TPU kernel.

    Args:
      x: (..., input_dim) array (any float dtype; cast to compute_dtype).
      params: HThetaParams from prepare_h_theta_params().
      block_m: target batch tile (the actual tile is auto-shaped; see
        _choose_tiling).  1024-2048 recommended for large batches.
      out_dtype: output dtype; defaults to params.compute_dtype (bf16) to
        halve HBM writeback.  Pass jnp.float32 to match torch exactly in
        storage dtype.
    Returns:
      (..., output_dim) array in out_dtype.
    """
    compute_dtype = params.compute_dtype
    if out_dtype is None:
        out_dtype = compute_dtype

    lead_shape = x.shape[:-1]
    x2 = x.reshape(-1, x.shape[-1])
    n, in_dim = x2.shape
    assert in_dim == params.in_dim, "input feature dim mismatch"
    in_dim_p = params.in_dim_padded
    out_dim_p = params.out_dim_padded
    n_linear = len(params.weights)

    bm, steps = _choose_tiling(n, block_m)
    n_p = bm * steps

    # Only materialize a padded copy of x when actually required; never
    # lane-pad the input features up to 128/256 (that was pure wasted HBM BW).
    if n_p != n or in_dim_p != in_dim:
        x_in = jnp.zeros((n_p, in_dim_p), compute_dtype).at[:n, :in_dim].set(
            x2.astype(compute_dtype))
    else:
        x_in = x2  # cast happens inside the kernel

    def x_map(i):
        return (i, 0)

    def const_map(i):
        return (0, 0)

    weight_pipeline = pl.Buffered(1) if single_buffer_weights else None

    in_specs = [pl.BlockSpec((bm, in_dim_p), x_map)]
    flat_params = []
    for w, b in zip(params.weights, params.biases):
        in_specs.append(
            pl.BlockSpec(w.shape, const_map, pipeline_mode=weight_pipeline))
        in_specs.append(
            pl.BlockSpec(b.shape, const_map, pipeline_mode=weight_pipeline))
        flat_params.extend([w, b])

    out_spec = pl.BlockSpec((bm, out_dim_p), x_map)

    # VMEM budget: resident params (+ double buffer if requested), live
    # activations during a layer (f32 acc + current/previous bf16 h), and
    # double-buffered x/out tiles.  Capped generation-aware.
    cd_bytes = jnp.dtype(compute_dtype).itemsize
    od_bytes = jnp.dtype(out_dtype).itemsize
    param_bytes = sum(w.size * w.dtype.itemsize + b.size * 4
                      for w, b in zip(params.weights, params.biases))
    if not single_buffer_weights:
        param_bytes *= 2
    max_h = max(w.shape[1] for w in params.weights)
    act_bytes = 3 * bm * max_h * 4
    io_bytes = (2 * bm * in_dim_p * jnp.dtype(x_in.dtype).itemsize
                + 2 * bm * out_dim_p * od_bytes)
    est = param_bytes + act_bytes + io_bytes
    vmem_limit = int(min(max(2 * est, 16 * 1024 * 1024), _vmem_limit_cap_bytes()))

    kernel = functools.partial(
        _mlp_kernel, n_linear=n_linear, compute_dtype=compute_dtype)

    out_p = pl.pallas_call(
        kernel,
        out_shape=jax.ShapeDtypeStruct((n_p, out_dim_p), out_dtype),
        grid_spec=pltpu.PrefetchScalarGridSpec(
            num_scalar_prefetch=0,
            grid=(steps,),
            in_specs=in_specs,
            out_specs=out_spec,
        ),
        compiler_params=pltpu.CompilerParams(
            dimension_semantics=("parallel",),
            vmem_limit_bytes=vmem_limit,
        ),
    )(x_in, *flat_params)

    out = out_p[:n, :params.out_dim]
    return out.reshape(lead_shape + (params.out_dim,))


def init_h_theta_params(key, input_dim, output_dim, num_layers=5, num_neurons=512):
    """Deterministic init matching the PyTorch layer shapes.

    Weights are (in_features, out_features) (already transposed relative to
    torch.nn.Linear.weight), uniform in [-1/sqrt(fan_in), 1/sqrt(fan_in)].
    """
    dims = [input_dim] + [num_neurons] * num_layers + [output_dim]
    weights, biases = [], []
    for li in range(len(dims) - 1):
        fan_in, fan_out = dims[li], dims[li + 1]
        key, wk, bk = jax.random.split(key, 3)
        bound = 1.0 / (fan_in ** 0.5)
        w = jax.random.uniform(wk, (fan_in, fan_out), jnp.float32, -bound, bound)
        b = jax.random.uniform(bk, (1, fan_out), jnp.float32, -bound, bound)
        weights.append(w)
        biases.append(b)
    return weights, biases


def _reference_forward(x, weights, biases, compute_dtype=jnp.bfloat16):
    """Pure-JAX reference mirroring the kernel's cast/accumulate pattern."""
    h = x.astype(compute_dtype)
    n_linear = len(weights)
    for li, (w, b) in enumerate(zip(weights, biases)):
        acc = jnp.dot(h, w.astype(compute_dtype),
                      preferred_element_type=jnp.float32) + b
        if li < n_linear - 1:
            h = jnp.maximum(acc, 0.0).astype(compute_dtype)
        else:
            h = acc
    return h


if __name__ == "__main__":
    # Small shapes consistent with the module: MLP over (batch, input_dim).
    INPUT_DIM = 8
    OUTPUT_DIM = 4
    NUM_LAYERS = 5
    NUM_NEURONS = 128        # smaller than the 512 default, same structure
    BATCH = 512              # grid of 4 x 128-row tiles (2 steps per v7x TC)
    COMPUTE_DTYPE = jnp.bfloat16  # bf16 operands on every generation (f32 acc)

    key = jax.random.PRNGKey(0)
    key, xk = jax.random.split(key)
    x = jax.random.normal(xk, (BATCH, INPUT_DIM), jnp.float32)

    weights, biases = init_h_theta_params(
        key, INPUT_DIM, OUTPUT_DIM, num_layers=NUM_LAYERS, num_neurons=NUM_NEURONS)

    # One-time parameter padding / bf16 cast (hoisted out of the forward).
    params = prepare_h_theta_params(weights, biases, compute_dtype=COMPUTE_DTYPE)

    out = jax.block_until_ready(
        h_theta_forward(x, params, block_m=1024,
                        compute_dtype_unused=None
                        if False else None,  # no-op placeholder removed below
                        ) if False else
        h_theta_forward(x, params, block_m=1024))

    ref = _reference_forward(x, weights, biases, compute_dtype=COMPUTE_DTYPE)

    assert out.shape == (BATCH, OUTPUT_DIM)
    assert jnp.allclose(out.astype(jnp.float32), ref.astype(jnp.float32),
                        atol=3e-2, rtol=3e-2), "mismatch vs reference"

    print("KERNEL_OK")
</pallas_src>

<mosaic_0001>
module attributes {stable_mosaic.version = 11 : i64} {
  func.func @_mlp_kernel(%arg0: i32, %arg1: memref<128x8xf32, #tpu.memory_space<vmem>>, %arg2: memref<8x256xbf16, #tpu.memory_space<vmem>>, %arg3: memref<1x256xf32, #tpu.memory_space<vmem>>, %arg4: memref<256x256xbf16, #tpu.memory_space<vmem>>, %arg5: memref<1x256xf32, #tpu.memory_space<vmem>>, %arg6: memref<256x256xbf16, #tpu.memory_space<vmem>>, %arg7: memref<1x256xf32, #tpu.memory_space<vmem>>, %arg8: memref<256x256xbf16, #tpu.memory_space<vmem>>, %arg9: memref<1x256xf32, #tpu.memory_space<vmem>>, %arg10: memref<256x256xbf16, #tpu.memory_space<vmem>>, %arg11: memref<1x256xf32, #tpu.memory_space<vmem>>, %arg12: memref<256x128xbf16, #tpu.memory_space<vmem>>, %arg13: memref<1x128xf32, #tpu.memory_space<vmem>>, %arg14: memref<128x128xbf16, #tpu.memory_space<vmem>>) attributes {dimension_semantics = [#tpu.dimension_semantics<parallel>], iteration_bounds = array<i64: 4>, scalar_prefetch = 0 : i64, scratch_operands = 0 : i64, tpu.core_type = #tpu.core_type<tc>, window_params = [{transform_indices = @transform_0, window_bounds = array<i64: 128, 8>}, {pipeline_mode = #tpu.pipeline_mode<synchronous>, transform_indices = @transform_1, window_bounds = array<i64: 8, 256>}, {pipeline_mode = #tpu.pipeline_mode<synchronous>, transform_indices = @transform_2, window_bounds = array<i64: 1, 256>}, {pipeline_mode = #tpu.pipeline_mode<synchronous>, transform_indices = @transform_3, window_bounds = array<i64: 256, 256>}, {pipeline_mode = #tpu.pipeline_mode<synchronous>, transform_indices = @transform_4, window_bounds = array<i64: 1, 256>}, {pipeline_mode = #tpu.pipeline_mode<synchronous>, transform_indices = @transform_5, window_bounds = array<i64: 256, 256>}, {pipeline_mode = #tpu.pipeline_mode<synchronous>, transform_indices = @transform_6, window_bounds = array<i64: 1, 256>}, {pipeline_mode = #tpu.pipeline_mode<synchronous>, transform_indices = @transform_7, window_bounds = array<i64: 256, 256>}, {pipeline_mode = #tpu.pipeline_mode<synchronous>, transform_indices = @transform_8, window_bounds = array<i64: 1, 256>}, {pipeline_mode = #tpu.pipeline_mode<synchronous>, transform_indices = @transform_9, window_bounds = array<i64: 256, 256>}, {pipeline_mode = #tpu.pipeline_mode<synchronous>, transform_indices = @transform_10, window_bounds = array<i64: 1, 256>}, {pipeline_mode = #tpu.pipeline_mode<synchronous>, transform_indices = @transform_11, window_bounds = array<i64: 256, 128>}, {pipeline_mode = #tpu.pipeline_mode<synchronous>, transform_indices = @transform_12, window_bounds = array<i64: 1, 128>}, {transform_indices = @transform_13, window_bounds = array<i64: 128, 128>}]} {
    %c0 = arith.constant 0 : index
    %c0_0 = arith.constant 0 : index
    %0 = vector.load %arg1[%c0, %c0_0] : memref<128x8xf32, #tpu.memory_space<vmem>>, vector<128x8xf32>
    %1 = arith.truncf %0 : vector<128x8xf32> to vector<128x8xbf16>
    %c0_1 = arith.constant 0 : index
    %c0_2 = arith.constant 0 : index
    %2 = vector.load %arg2[%c0_1, %c0_2] : memref<8x256xbf16, #tpu.memory_space<vmem>>, vector<8x256xbf16>
    %c0_3 = arith.constant 0 : index
    %c0_4 = arith.constant 0 : index
    %3 = vector.load %arg3[%c0_3, %c0_4] : memref<1x256xf32, #tpu.memory_space<vmem>>, vector<1x256xf32>
    %cst = arith.constant dense<0.000000e+00> : vector<128x256xf32>
    %4 = tpu.matmul %1, %2, %cst {dimension_numbers = #tpu.dot_dimension_numbers<[1], [0], [0], [1], [0, 0, 1, 1], [], []>} : vector<128x8xbf16>, vector<8x256xbf16>, vector<128x256xf32> -> vector<128x256xf32>
    %5 = vector.broadcast %3 : vector<1x256xf32> to vector<128x256xf32>
    %6 = arith.addf %4, %5 : vector<128x256xf32>
    %cst_5 = arith.constant 0.000000e+00 : f32
    %7 = vector.broadcast %cst_5 : f32 to vector<128x256xf32>
    %8 = arith.maximumf %6, %7 : vector<128x256xf32>
    %9 = arith.truncf %8 : vector<128x256xf32> to vector<128x256xbf16>
    %c0_6 = arith.constant 0 : index
    %c0_7 = arith.constant 0 : index
    %10 = vector.load %arg4[%c0_6, %c0_7] : memref<256x256xbf16, #tpu.memory_space<vmem>>, vector<256x256xbf16>
    %c0_8 = arith.constant 0 : index
    %c0_9 = arith.constant 0 : index
    %11 = vector.load %arg5[%c0_8, %c0_9] : memref<1x256xf32, #tpu.memory_space<vmem>>, vector<1x256xf32>
    %cst_10 = arith.constant dense<0.000000e+00> : vector<128x256xf32>
    %12 = tpu.matmul %9, %10, %cst_10 {dimension_numbers = #tpu.dot_dimension_numbers<[1], [0], [0], [1], [0, 0, 1, 1], [], []>} : vector<128x256xbf16>, vector<256x256xbf16>, vector<128x256xf32> -> vector<128x256xf32>
    %13 = vector.broadcast %11 : vector<1x256xf32> to vector<128x256xf32>
    %14 = arith.addf %12, %13 : vector<128x256xf32>
    %cst_11 = arith.constant 0.000000e+00 : f32
    %15 = vector.broadcast %cst_11 : f32 to vector<128x256xf32>
    %16 = arith.maximumf %14, %15 : vector<128x256xf32>
    %17 = arith.truncf %16 : vector<128x256xf32> to vector<128x256xbf16>
    %c0_12 = arith.constant 0 : index
    %c0_13 = arith.constant 0 : index
    %18 = vector.load %arg6[%c0_12, %c0_13] : memref<256x256xbf16, #tpu.memory_space<vmem>>, vector<256x256xbf16>
    %c0_14 = arith.constant 0 : index
    %c0_15 = arith.constant 0 : index
    %19 = vector.load %arg7[%c0_14, %c0_15] : memref<1x256xf32, #tpu.memory_space<vmem>>, vector<1x256xf32>
    %cst_16 = arith.constant dense<0.000000e+00> : vector<128x256xf32>
    %20 = tpu.matmul %17, %18, %cst_16 {dimension_numbers = #tpu.dot_dimension_numbers<[1], [0], [0], [1], [0, 0, 1, 1], [], []>} : vector<128x256xbf16>, vector<256x256xbf16>, vector<128x256xf32> -> vector<128x256xf32>
    %21 = vector.broadcast %19 : vector<1x256xf32> to vector<128x256xf32>
    %22 = arith.addf %20, %21 : vector<128x256xf32>
    %cst_17 = arith.constant 0.000000e+00 : f32
    %23 = vector.broadcast %cst_17 : f32 to vector<128x256xf32>
    %24 = arith.maximumf %22, %23 : vector<128x256xf32>
    %25 = arith.truncf %24 : vector<128x256xf32> to vector<128x256xbf16>
    %c0_18 = arith.constant 0 : index
    %c0_19 = arith.constant 0 : index
    %26 = vector.load %arg8[%c0_18, %c0_19] : memref<256x256xbf16, #tpu.memory_space<vmem>>, vector<256x256xbf16>
    %c0_20 = arith.constant 0 : index
    %c0_21 = arith.constant 0 : index
    %27 = vector.load %arg9[%c0_20, %c0_21] : memref<1x256xf32, #tpu.memory_space<vmem>>, vector<1x256xf32>
    %cst_22 = arith.constant dense<0.000000e+00> : vector<128x256xf32>
    %28 = tpu.matmul %25, %26, %cst_22 {dimension_numbers = #tpu.dot_dimension_numbers<[1], [0], [0], [1], [0, 0, 1, 1], [], []>} : vector<128x256xbf16>, vector<256x256xbf16>, vector<128x256xf32> -> vector<128x256xf32>
    %29 = vector.broadcast %27 : vector<1x256xf32> to vector<128x256xf32>
    %30 = arith.addf %28, %29 : vector<128x256xf32>
    %cst_23 = arith.constant 0.000000e+00 : f32
    %31 = vector.broadcast %cst_23 : f32 to vector<128x256xf32>
    %32 = arith.maximumf %30, %31 : vector<128x256xf32>
    %33 = arith.truncf %32 : vector<128x256xf32> to vector<128x256xbf16>
    %c0_24 = arith.constant 0 : index
    %c0_25 = arith.constant 0 : index
    %34 = vector.load %arg10[%c0_24, %c0_25] : memref<256x256xbf16, #tpu.memory_space<vmem>>, vector<256x256xbf16>
    %c0_26 = arith.constant 0 : index
    %c0_27 = arith.constant 0 : index
    %35 = vector.load %arg11[%c0_26, %c0_27] : memref<1x256xf32, #tpu.memory_space<vmem>>, vector<1x256xf32>
    %cst_28 = arith.constant dense<0.000000e+00> : vector<128x256xf32>
    %36 = tpu.matmul %33, %34, %cst_28 {dimension_numbers = #tpu.dot_dimension_numbers<[1], [0], [0], [1], [0, 0, 1, 1], [], []>} : vector<128x256xbf16>, vector<256x256xbf16>, vector<128x256xf32> -> vector<128x256xf32>
    %37 = vector.broadcast %35 : vector<1x256xf32> to vector<128x256xf32>
    %38 = arith.addf %36, %37 : vector<128x256xf32>
    %cst_29 = arith.constant 0.000000e+00 : f32
    %39 = vector.broadcast %cst_29 : f32 to vector<128x256xf32>
    %40 = arith.maximumf %38, %39 : vector<128x256xf32>
    %41 = arith.truncf %40 : vector<128x256xf32> to vector<128x256xbf16>
    %c0_30 = arith.constant 0 : index
    %c0_31 = arith.constant 0 : index
    %42 = vector.load %arg12[%c0_30, %c0_31] : memref<256x128xbf16, #tpu.memory_space<vmem>>, vector<256x128xbf16>
    %c0_32 = arith.constant 0 : index
    %c0_33 = arith.constant 0 : index
    %43 = vector.load %arg13[%c0_32, %c0_33] : memref<1x128xf32, #tpu.memory_space<vmem>>, vector<1x128xf32>
    %cst_34 = arith.constant dense<0.000000e+00> : vector<128x128xf32>
    %44 = tpu.matmul %41, %42, %cst_34 {dimension_numbers = #tpu.dot_dimension_numbers<[1], [0], [0], [1], [0, 0, 1, 1], [], []>} : vector<128x256xbf16>, vector<256x128xbf16>, vector<128x128xf32> -> vector<128x128xf32>
    %45 = vector.broadcast %43 : vector<1x128xf32> to vector<128x128xf32>
    %46 = arith.addf %44, %45 : vector<128x128xf32>
    %47 = arith.truncf %46 : vector<128x128xf32> to vector<128x128xbf16>
    %c0_35 = arith.constant 0 : index
    %c0_36 = arith.constant 0 : index
    %48 = vector.load %arg14[%c0_35, %c0_36] : memref<128x128xbf16, #tpu.memory_space<vmem>>, vector<128x128xbf16>
    tpu.vector_store %arg14[%c0_35, %c0_36], %47 {strides = array<i32>} : memref<128x128xbf16, #tpu.memory_space<vmem>>, vector<128x128xbf16>,
    return
  }
  func.func @transform_0(%arg0: i32) -> (i32, i32) {
    %c0_i32 = arith.constant 0 : i32
    %c0_i32_0 = arith.constant 0 : i32
    return %arg0, %c0_i32 : i32, i32
  }
  func.func @transform_1(%arg0: i32) -> (i32, i32) {
    %c0_i32 = arith.constant 0 : i32
    %c0_i32_0 = arith.constant 0 : i32
    %c0_i32_1 = arith.constant 0 : i32
    return %c0_i32, %c0_i32_0 : i32, i32
  }
  func.func @transform_2(%arg0: i32) -> (i32, i32) {
    %c0_i32 = arith.constant 0 : i32
    %c0_i32_0 = arith.constant 0 : i32
    %c0_i32_1 = arith.constant 0 : i32
    return %c0_i32, %c0_i32_0 : i32, i32
  }
  func.func @transform_3(%arg0: i32) -> (i32, i32) {
    %c0_i32 = arith.constant 0 : i32
    %c0_i32_0 = arith.constant 0 : i32
    %c0_i32_1 = arith.constant 0 : i32
    return %c0_i32, %c0_i32_0 : i32, i32
  }
  func.func @transform_4(%arg0: i32) -> (i32, i32) {
    %c0_i32 = arith.constant 0 : i32
    %c0_i32_0 = arith.constant 0 : i32
    %c0_i32_1 = arith.constant 0 : i32
    return %c0_i32, %c0_i32_0 : i32, i32
  }
  func.func @transform_5(%arg0: i32) -> (i32, i32) {
    %c0_i32 = arith.constant 0 : i32
    %c0_i32_0 = arith.constant 0 : i32
    %c0_i32_1 = arith.constant 0 : i32
    return %c0_i32, %c0_i32_0 : i32, i32
  }
  func.func @transform_6(%arg0: i32) -> (i32, i32) {
    %c0_i32 = arith.constant 0 : i32
    %c0_i32_0 = arith.constant 0 : i32
    %c0_i32_1 = arith.constant 0 : i32
    return %c0_i32, %c0_i32_0 : i32, i32
  }
  func.func @transform_7(%arg0: i32) -> (i32, i32) {
    %c0_i32 = arith.constant 0 : i32
    %c0_i32_0 = arith.constant 0 : i32
    %c0_i32_1 = arith.constant 0 : i32
    return %c0_i32, %c0_i32_0 : i32, i32
  }
  func.func @transform_8(%arg0: i32) -> (i32, i32) {
    %c0_i32 = arith.constant 0 : i32
    %c0_i32_0 = arith.constant 0 : i32
    %c0_i32_1 = arith.constant 0 : i32
    return %c0_i32, %c0_i32_0 : i32, i32
  }
  func.func @transform_9(%arg0: i32) -> (i32, i32) {
    %c0_i32 = arith.constant 0 : i32
    %c0_i32_0 = arith.constant 0 : i32
    %c0_i32_1 = arith.constant 0 : i32
    return %c0_i32, %c0_i32_0 : i32, i32
  }
  func.func @transform_10(%arg0: i32) -> (i32, i32) {
    %c0_i32 = arith.constant 0 : i32
    %c0_i32_0 = arith.constant 0 : i32
    %c0_i32_1 = arith.constant 0 : i32
    return %c0_i32, %c0_i32_0 : i32, i32
  }
  func.func @transform_11(%arg0: i32) -> (i32, i32) {
    %c0_i32 = arith.constant 0 : i32
    %c0_i32_0 = arith.constant 0 : i32
    %c0_i32_1 = arith.constant 0 : i32
    return %c0_i32, %c0_i32_0 : i32, i32
  }
  func.func @transform_12(%arg0: i32) -> (i32, i32) {
    %c0_i32 = arith.constant 0 : i32
    %c0_i32_0 = arith.constant 0 : i32
    %c0_i32_1 = arith.constant 0 : i32
    return %c0_i32, %c0_i32_0 : i32, i32
  }
  func.func @transform_13(%arg0: i32) -> (i32, i32) {
    %c0_i32 = arith.constant 0 : i32
    %c0_i32_0 = arith.constant 0 : i32
    return %arg0, %c0_i32 : i32, i32
  }
}

</mosaic_0001>

<bundles_post_ra>
// kernel: tpu_custom_call.1
= control target key start
LH: loop header
LB: loop body
LE: loop exit
PB: predicated region body
PF: predicated region fallthrough
CT: control target
= control target key end

     0   :  { %s4151_s0 = inlined_call_operand.vmem [shape: f32[512,8], index: 0, kind: input, shape index: {}]   ;;  %s4152_s1 = inlined_call_operand.vmem [shape: bf16[8,256], index: 1, kind: input, shape index: {}]   ;;  %s4153_s2 = inlined_call_operand.vmem [shape: f32[1,256], index: 2, kind: input, shape index: {}]   ;;  %s4154_s3 = inlined_call_operand.vmem [shape: bf16[256,256], index: 3, kind: input, shape index: {}]   ;;  %s4155_s4 = inlined_call_operand.vmem [shape: f32[1,256], index: 4, kind: input, shape index: {}]   ;;  %s4156_s5 = inlined_call_operand.vmem [shape: bf16[256,256], index: 5, kind: input, shape index: {}]   ;;  %s4157_s6 = inlined_call_operand.vmem [shape: f32[1,256], index: 6, kind: input, shape index: {}]   ;;  %s4158_s7 = inlined_call_operand.hbm [shape: bf16[256,256], index: 7, kind: input, shape index: {}]   ;;  %s4159_s8 = inlined_call_operand.vmem [shape: f32[1,256], index: 8, kind: input, shape index: {}]   ;;  %s4160_s9 = inlined_call_operand.hbm [shape: bf16[256,256], index: 9, kind: input, shape index: {}]   ;;  %s4161_s10 = inlined_call_operand.vmem [shape: f32[1,256], index: 10, kind: input, shape index: {}]   ;;  %s4162_s11 = inlined_call_operand.hbm [shape: bf16[256,128], index: 11, kind: input, shape index: {}]   ;;  %s4163_s12 = inlined_call_operand.vmem [shape: f32[1,128], index: 12, kind: input, shape index: {}]   ;;  %s4164_s13 = inlined_call_operand.hbm [shape: bf16[512,128], index: 13, kind: output, shape index: {}]  }
   0x1   :  { %4177 = sst [smem:[#allocation19_spill]] %s4163_s12 }
   0x2   :  { %4178 = sst [smem:[#allocation20_spill]] %s4164_s13 }
   0x3   :  { %18 = vsyncpa [#allocation3], 0 }
   0x4   :  { %19 = vsyncpa [#allocation6], 0 }
   0x5   :  { %20 = vsyncpa [#allocation4], 0 }
   0x6   :  { %22 = vsyncpa [#allocation4 + $0x1], 0  ;;  %s3459_s25 = smov 0   ;;  %s3461_s26 = smov 0  }
   0x7   :  { %s3463_s27 = smov 0   ;;  %s3465_s28 = smov 0  }
   0x8 LB: > { %4179 = sst [smem:[#allocation12_spill]] %s3364_s25  ;;  %s3480_s29 = sadd.s32 4294967295, %s3376_s28   ;;  %s3376_s28 = sphi %s3465_s28, %s4204_s28   ;;  %s3372_s27 = sphi %s3463_s27, %s4206_s27   ;;  %s3368_s26 = sphi %s3461_s26, %s4208_s26   ;;  %s3364_s25 = sphi %s3459_s25, %s4207_s25  }
   0x9   : > { %4180 = sst [smem:[#allocation13_spill]] %s3372_s27  ;;  %s2601_s30 = sadd.s32 4294967294, %s3376_s28  }
   0xa   : > { %4181 = sst [smem:[#allocation14_spill]] %s3376_s28  ;;  %s3484_s14 = sadd.s32 1, %s3376_s28  }
   0xb   : > { %4182 = sst [smem:[#allocation15_spill]] %s3484_s14  ;;  %s313_s15 = sadd.s32 1, %s3372_s27 }
   0xc   : > { %s310_s16 = ssub.s32 %s3376_s28, %s3484_s14  ;;  %p323_p0 = scmp.ne.s32.totalorder %s3372_s27, %s3368_s26 }
   0xd   : > { %p311_p1 = scmp.eq.s32.totalorder %s310_s16, 0  ;;  %p324_p2 = scmp.eq.s32.totalorder %s3480_s29, 3 }
   0xe   : > { %p329_p3 = scmp.ne.s32.totalorder %s3368_s26, %s3364_s25  ;;  %p330_p4 = scmp.eq.s32.totalorder %s2601_s30, 3 }
   0xf   : > { %s3495_s17 = scalar_select %p311_p1, %s3372_s27, %s313_s15  }
  0x10   : > { %p3497_p5 = por %p324_p2, %p323_p0  ;;  %p3501_p6 = por %p330_p4, %p329_p3 }
  0x11   : > { %4183 = sst [smem:[#allocation16_spill]] %s3495_s17  ;;  %p2602_p7 = scmp.ge.s32.totalorder %s3376_s28, 1 }
  0x12   : > { %s4184_s18 = scalar_select %p3497_p5, 1, 0 }
  0x13   : > { %s4186_s19 = scalar_select %p3501_p6, 1, 0 }
  0x14   : > { %4185 = sst [smem:[#allocation17_spill]] %s4184_s18  ;;  %p337_p8 = scmp.lt.s32.totalorder %s3376_s28, 5 }
  0x15   : > { %4187 = sst [smem:[#allocation18_spill]] %s4186_s19  ;;  %p4170_p9 = scmp.eq.s32.totalorder %s3480_s29, 0 }
  0x16   : > { %p3508_p10 = pnand %p2602_p7, %p337_p8  ;;  %s3378_s21 = smov [#allocation5]  }
  0x17   : > { %s383_s22 = sshll.u32 %s3378_s21, 4  ;;  %s3379_s24 = smov [#allocation2]   ;;  %s3514_s22 = int_to_ptr.vmem [resolvable:$true] %s383_s22 }
  0x18   : > { %s4188_s20 = scalar_select %p3508_p10, 1, 0 }
  0x19   : > { %p2949_p11 = pneg %p3508_p10  ;;  %s367_s30 = sshll.u32 %s3379_s24, 4  ;;  %s3522_s30 = int_to_ptr.vmem [resolvable:$true] %s367_s30 }
  0x1a   : > { %s3380_s15 = smov [#allocation7]   ;;  %s3222_s14 = scalar_lea.hbm %s4160_s9, 4096 }
  0x1b   : > { %p3518_p12 = pnand %p4170_p9, %p2949_p11  ;;  %s3524_s16 = sshll.u32 %s3380_s15, 4  ;;  %s400_s16 = int_to_ptr.vmem [resolvable:$true] %s3524_s16 }
  0x1c   : > { %p3223_p13 = scmp.ne.s32.totalorder %s4160_s9, %s3222_s14  ;;  %p3229_p3 = scmp.lt.u32.totalorder %s3222_s14, %s4160_s9 }
  0x1d   : > { %p3534_p0 = pneg %p3518_p12 }
  0x1f   : > { %p3225_p1 = pnand %p3534_p0, %p3223_p13 }
  0x21   : > { %p3226_p2 = pneg %p3225_p1 }
  0x23   : > { %p3231_p4 = pnand %p3229_p3, %p3226_p2 }
  0x25   : > { %3234 = shalt.err (!%p3231_p4)
}
  0x26   : > { %s3235_s27 = scalar_lea.vmem %s3514_s22, 4096  ;;  %p3243_p9 = scmp.lt.s32.totalorder %s3514_s22, %s3514_s22 }
  0x27   : > { %p3236_p7 = scmp.ne.s32.totalorder %s3514_s22, %s3235_s27  ;;  %p3244_p6 = scmp.lt.s32.totalorder %s3235_s27, %s3235_s27 }
  0x29   : > { %p3238_p8 = pnand %p3236_p7, %p3534_p0  ;;  %p3245_p13 = por %p3244_p6, %p3243_p9 }
  0x2b   : > { %p3239_p11 = pneg %p3238_p8 }
  0x2d   : > { %p3246_p1 = pnand %p3245_p13, %p3239_p11 }
  0x2f   : > { %3249 = shalt.err (!%p3246_p1)
}
  0x30   : > { %s3381_s17 = smov 128   ;;  %s3382_s14 = smov 8  }
  0x31   : > { %2955 = dma.hbm_to_vmem [thread:$0]  (!%p3518_p12), %s4160_s9, 4096, %s3514_s22, [#allocation6], %s3381_s17, %s3381_s17, %s3382_s14  }
  0x32   : > { %s3250_s28 = scalar_lea.hbm %s4158_s7, 4096 }
  0x33   : > { %p3251_p6 = scmp.ne.s32.totalorder %s4158_s7, %s3250_s28  ;;  %p3257_p3 = scmp.lt.u32.totalorder %s3250_s28, %s4158_s7 }
  0x35   : > { %p3253_p9 = pnand %p3251_p6, %p3534_p0 }
  0x37   : > { %p3254_p2 = pneg %p3253_p9 }
  0x39   : > { %p3259_p4 = pnand %p3257_p3, %p3254_p2 }
  0x3b   : > { %3262 = shalt.err (!%p3259_p4)
}
  0x3c   : > { %s3263_s22 = scalar_lea.vmem %s3522_s30, 4096  ;;  %p3271_p13 = scmp.lt.s32.totalorder %s3522_s30, %s3522_s30 }
  0x3d   : > { %p3264_p7 = scmp.ne.s32.totalorder %s3522_s30, %s3263_s22  ;;  %p3272_p1 = scmp.lt.s32.totalorder %s3263_s22, %s3263_s22 }
  0x3f   : > { %p3266_p8 = pnand %p3264_p7, %p3534_p0  ;;  %p3273_p6 = por %p3272_p1, %p3271_p13 }
  0x41   : > { %p3267_p11 = pneg %p3266_p8 }
  0x43   : > { %p3274_p9 = pnand %p3273_p6, %p3267_p11 }
  0x45   : > { %3277 = shalt.err (!%p3274_p9)
}
  0x46   : > { %2952 = dma.hbm_to_vmem [thread:$0]  (!%p3518_p12), %s4158_s7, 4096, %s3522_s30, [#allocation3], %s3381_s17, %s3381_s17, %s3382_s14  }
  0x47   : > { %s3278_s19 = scalar_lea.hbm %s4162_s11, 2048 }
  0x48   : > { %p3279_p2 = scmp.ne.s32.totalorder %s4162_s11, %s3278_s19  ;;  %p3285_p7 = scmp.lt.u32.totalorder %s3278_s19, %s4162_s11 }
  0x4a   : > { %p3281_p3 = pnand %p3279_p2, %p3534_p0 }
  0x4c   : > { %p3282_p4 = pneg %p3281_p3 }
  0x4e   : > { %p3287_p8 = pnand %p3285_p7, %p3282_p4 }
  0x50   : > { %3290 = shalt.err (!%p3287_p8)
}
  0x51   : > { %s3291_s22 = scalar_lea.vmem %s400_s16, 2048  ;;  %p3299_p6 = scmp.lt.s32.totalorder %s400_s16, %s400_s16 }
  0x52   : > { %p3292_p11 = scmp.ne.s32.totalorder %s400_s16, %s3291_s22  ;;  %p3300_p9 = scmp.lt.s32.totalorder %s3291_s22, %s3291_s22 }
  0x54   : > { %p3294_p13 = pnand %p3292_p11, %p3534_p0  ;;  %p3301_p5 = por %p3300_p9, %p3299_p6 }
  0x56   : > { %p3295_p1 = pneg %p3294_p13 }
  0x58   : > { %p3302_p10 = pnand %p3301_p5, %p3295_p1 }
  0x5a   : > { %3305 = shalt.err (!%p3302_p10)
}
  0x5b   : > { %s3383_s30 = smov 64   ;;  %s3384_s17 = smov 4  }
  0x5c   : > { %2958 = dma.hbm_to_vmem [thread:$0]  (!%p3518_p12), %s4162_s11, 2048, %s400_s16, [#allocation6], %s3383_s30, %s3383_s30, %s3384_s17  }
  0x5d   : > { %p4191_p2 = scmp.ne.s32.totalorder %s4188_s20, 0 }
  0x5e   : > { %p4192_p3 = scmp.eq.s32.totalorder (!%p4191_p2), %s3480_s29, 0 }
  0x5f   : > { %427 = sbr.rel (%p4191_p2) target bundleno = 1518 (0x5ee), region = 72 }
  0x66   : > { %3351 = dma.done.wait (%p4192_p3), [#allocation3], 4096   ;;  %p4193_p0 = pmov %p4192_p3 }
  0x68   : > { %3353 = vsyncadd (%p4193_p0), [#allocation3], 4294963200  ;;  %p4194_p5 = pmov %p4193_p0 }
  0x69   : > { %p4195_p10 = pmov %p4193_p0 }
  0x6a   : > { %3355 = dma.done.wait (%p4194_p5), [#allocation6], 6144  }
  0x6b   : > { %3357 = vsyncadd (%p4195_p10), [#allocation6], 4294961152  ;;  %s2612_s25 = sshll.u32 %s3480_s29, 4  ;;  %v3385_v0 = vmov 0   ;;  %v511_v1 = vld [vmem:[%s4152_s1] sm:$0xff]  ;;  %vm554_vm0 = vcmask 1043456  }
  0x6c   : > { %593 = vmatprep.mubr.bf16.mxu0 %v3385_v0  ;;  %p480_p12 = scmp.lt.s32.totalorder %s2612_s25, 63  ;;  %v2615_v4 = vcombine.high %v511_v1, %v511_v1  ;;  %v2614_v5 = vcombine.low %v511_v1, %v511_v1  ;;  %vm529_vm1 = vcmask 64512   ;;  %v3014_v9 = vld [vmem:[%s4154_s3 + $0x4] ss:$8 sps:$4 sm:$0xff]   ;;  %v3016_v10 = vld [vmem:[%s4154_s3] ss:$8 sps:$4 sm:$0xff]  }
  0x6d   : > { %v3017_v11 = vld [vmem:[%s4154_s3 + $0x14] ss:$8 sps:$4 sm:$0xff]   ;;  %926 = vmatprep.subr.bf16.mxu1 %v3014_v9  ;;  %v3019_v13 = vld [vmem:[%s4154_s3 + $0x10] ss:$8 sps:$4 sm:$0xff]   ;;  %v3020_v14 = vld [vmem:[%s4154_s3 + $0x24] ss:$8 sps:$4 sm:$0xff]  }
  0x6e   : > { %s4210_s25 = smov (!%p480_p12, %s2612_s25), 63  ;;  %2616 = vmatprep.subr.msk.bf16.mxu0 %vm554_vm0, %v2615_v4  ;;  %v556_v6 = vsel %vm554_vm0, %v2614_v5, 0  ;;  %927 = vmatpush1.bf16.msra.mxu1 %v3016_v10  ;;  %v3022_v16 = vld [vmem:[%s4154_s3 + $0x20] ss:$8 sps:$4 sm:$0xff]   ;;  %v3023_v17 = vld [vmem:[%s4154_s3 + $0x34] ss:$8 sps:$4 sm:$0xff]  }
  0x6f   : > { %s2613_s20 = sshll.u32 %s4210_s25, 3  ;;  %562 = vmatpush1.bf16.msra.mxu0 %v556_v6  ;;  %928 = vmatprep.subr.bf16.mxu1 %v3017_v11  ;;  %v3025_v20 = vld [vmem:[%s4154_s3 + $0x30] ss:$8 sps:$4 sm:$0xff]   ;;  %v3026_v21 = vld [vmem:[%s4154_s3 + $0x44] ss:$8 sps:$4 sm:$0xff]   ;;  %s476_s22 = sand.u32 1, %s3368_s26  }
  0x70   : > { %s3612_s13 = scalar_lea.vmem %s4151_s0, %s2613_s20  ;;  %v3028_v23 = vld [vmem:[%s4154_s3 + $0x40] ss:$8 sps:$4 sm:$0xff]   ;;  %v3029_v26 = vld [vmem:[%s4154_s3 + $0x54] ss:$8 sps:$4 sm:$0xff]   ;;  %v3031_v27 = vld [vmem:[%s4154_s3 + $0x50] ss:$8 sps:$4 sm:$0xff]  }
  0x71   : > { %v487_v2 = vld [vmem:[%s3612_s13] sm:$0xff]  ;;  %v488_v3 = vld [vmem:[%s3612_s13 + $0x8] sm:$0xff]  ;;  %v489_v8 = vld [vmem:[%s3612_s13 + $0x10] sm:$0xff]  ;;  %s4196_s14 = sld [smem:[#allocation19_spill]]  ;;  %s2611_s12 = sshll.u32 %s476_s22, 6 }
  0x72   : > { %v503_v7 = vpack.c.bf16 %v488_v3, %v487_v2  ;;  %v490_v12 = vld [vmem:[%s3612_s13 + $0x18] sm:$0xff]  ;;  %929 = vmatpush1.bf16.msra.mxu1 %v3019_v13  ;;  %v491_v18 = vld [vmem:[%s3612_s13 + $0x20] sm:$0xff]  ;;  %v492_v19 = vld [vmem:[%s3612_s13 + $0x28] sm:$0xff]  ;;  %s4197_s25 = sld [smem:[#allocation17_spill]]  ;;  %s2807_s20 = sshll.u32 %s3480_s29, 10 }
  0x73   : > { %v504_v15 = vpack.c.bf16 %v490_v12, %v489_v8  ;;  %930 = vmatprep.subr.bf16.mxu1 %v3020_v14  ;;  %v505_v22 = vpack.c.bf16 %v492_v19, %v491_v18  ;;  %v493_v24 = vld [vmem:[%s3612_s13 + $0x30] sm:$0xff]  ;;  %v494_v25 = vld [vmem:[%s3612_s13 + $0x38] sm:$0xff]  ;;  %v3032_v28 = vld [vmem:[%s4154_s3 + $0x64] ss:$8 sps:$4 sm:$0xff]   ;;  %s4198_s18 = sld [smem:[#allocation20_spill]]  ;;  %s4110_s21 = scalar_lea.sflag [#allocation4], %s476_s22 }
  0x74   : > { %2617 = vmatmul.mubr.msk.bf16.vlgmr.msra.gmra.mrb[0].mxu0 %vm529_vm1, %v503_v7  ;;  %v506_v29 = vpack.c.bf16 %v494_v25, %v493_v24  ;;  %v3034_v30 = vld [vmem:[%s4154_s3 + $0x60] ss:$8 sps:$4 sm:$0xff]   ;;  %v3035_v31 = vld [vmem:[%s4154_s3 + $0x74] ss:$8 sps:$4 sm:$0xff]   ;;  %v3037_v34 = vld [vmem:[%s4154_s3 + $0x70] ss:$8 sps:$4 sm:$0xff]  }
  0x75   : > { %603 = vmatprep.mubr.bf16.mxu0 %v3385_v0  ;;  %v495_v32 = vld [vmem:[%s3612_s13 + $0x40] sm:$0xff]  ;;  %v496_v33 = vld [vmem:[%s3612_s13 + $0x48] sm:$0xff]  ;;  %v3041_v38 = vld [vmem:[%s4154_s3 + $0x94] ss:$8 sps:$4 sm:$0xff]   ;;  %s3386_s24 = smov [#allocation8]  }
  0x76   : > { %931 = vmatpush1.bf16.msra.mxu1 %v3022_v16  ;;  %v3038_v35 = vld [vmem:[%s4154_s3 + $0x84] ss:$8 sps:$4 sm:$0xff]   ;;  %v507_v36 = vpack.c.bf16 %v496_v33, %v495_v32  ;;  %v3040_v37 = vld [vmem:[%s4154_s3 + $0x80] ss:$8 sps:$4 sm:$0xff]   ;;  %v497_v39 = vld [vmem:[%s3612_s13 + $0x50] sm:$0xff]  ;;  %s3310_s15 = sshll.u32 %s3386_s24, 4  ;;  %s3311_s15 = int_to_ptr.vmem [resolvable:$false] %s3310_s15 }
  0x77   : > { %932 = vmatprep.subr.bf16.mxu1 %v3023_v17  ;;  %v498_v40 = vld [vmem:[%s3612_s13 + $0x58] sm:$0xff]  ;;  %v3044_v42 = vld [vmem:[%s4154_s3 + $0xa4] ss:$8 sps:$4 sm:$0xff]   ;;  %v3046_v44 = vld [vmem:[%s4154_s3 + $0xa0] ss:$8 sps:$4 sm:$0xff]   ;;  %s3312_s27 = scalar_lea.vmem %s3311_s15, 2048 }
  0x78   : > { %v3043_v41 = vld [vmem:[%s4154_s3 + $0x90] ss:$8 sps:$4 sm:$0xff]   ;;  %v508_v43 = vpack.c.bf16 %v498_v40, %v497_v39  ;;  %v3047_v45 = vld [vmem:[%s4154_s3 + $0xb4] ss:$8 sps:$4 sm:$0xff]   ;;  %v499_v46 = vld [vmem:[%s3612_s13 + $0x60] sm:$0xff]  ;;  %p4199_p7 = scmp.ne.s32.totalorder %s4197_s25, 0 }
  0x79   : > { %v500_v47 = vld [vmem:[%s3612_s13 + $0x68] sm:$0xff]  ;;  %v3049_v48 = vld [vmem:[%s4154_s3 + $0xb0] ss:$8 sps:$4 sm:$0xff]   ;;  %v3053_v52 = vld [vmem:[%s4154_s3 + $0xd4] ss:$8 sps:$4 sm:$0xff]   ;;  %s4103_s19 = scalar_lea.hbm %s4198_s18, %s2807_s20 }
  0x7a   : > { %933 = vmatpush1.bf16.msra.mxu1 %v3025_v20  ;;  %v3050_v49 = vld [vmem:[%s4154_s3 + $0xc4] ss:$8 sps:$4 sm:$0xff]   ;;  %v509_v50 = vpack.c.bf16 %v500_v47, %v499_v46  ;;  %v3052_v51 = vld [vmem:[%s4154_s3 + $0xc0] ss:$8 sps:$4 sm:$0xff]   ;;  %v501_v53 = vld [vmem:[%s3612_s13 + $0x70] sm:$0xff] }
  0x7b   : > { %934 = vmatprep.subr.bf16.mxu1 %v3026_v21  ;;  %v502_v54 = vld [vmem:[%s3612_s13 + $0x78] sm:$0xff]  ;;  %v3056_v57 = vld [vmem:[%s4154_s3 + $0xe4] ss:$8 sps:$4 sm:$0xff]   ;;  %v3058_v58 = vld [vmem:[%s4154_s3 + $0xe0] ss:$8 sps:$4 sm:$0xff]   ;;  %s4075_s13 = scalar_lea.vmem [#allocation8], %s2611_s12 }
  0x7c   : > { %2618 = vmatmul.mubr.msk.bf16.gmra.mrb[4].mxu0 %vm529_vm1, %v504_v15  ;;  %v510_v55 = vpack.c.bf16 %v502_v54, %v501_v53  ;;  %v3055_v56 = vld [vmem:[%s4154_s3 + $0xd0] ss:$8 sps:$4 sm:$0xff]   ;;  %v3059_v59 = vld [vmem:[%s4154_s3 + $0xf4] ss:$8 sps:$4 sm:$0xff]   ;;  %v3062_v61 = vld [vmem:[%s4156_s5] ss:$8 sps:$4 sm:$0xff]  }
  0x7d   : > { %613 = vmatprep.mubr.bf16.mxu0 %v3385_v0  ;;  %v3061_v60 = vld [vmem:[%s4154_s3 + $0xf0] ss:$8 sps:$4 sm:$0xff]   ;;  %v3064_v62 = vld [vmem:[%s4156_s5 + $0x4] ss:$8 sps:$4 sm:$0xff]   ;;  %v3067_v63 = vld [vmem:[%s4156_s5 + $0x14] ss:$8 sps:$4 sm:$0xff]  }
  0x7e   : > { %935 = vmatpush1.bf16.msra.mxu1 %v3028_v23  ;;  %1291 = vmatprep.subr.bf16.mxu0 %v3064_v62  ;;  %v3070_v1 = vld [vmem:[%s4156_s5 + $0x24] ss:$8 sps:$4 sm:$0xff]   ;;  %v3068_v2 = vld [vmem:[%s4156_s5 + $0x20] ss:$8 sps:$4 sm:$0xff]   ;;  %v3073_v3 = vld [vmem:[%s4156_s5 + $0x34] ss:$8 sps:$4 sm:$0xff]  }
  0x7f   : > { %936 = vmatprep.subr.bf16.mxu1 %v3029_v26  ;;  %1292 = vmatpush1.bf16.msra.mxu0 %v3062_v61  ;;  %v3071_v4 = vld [vmem:[%s4156_s5 + $0x30] ss:$8 sps:$4 sm:$0xff]   ;;  %v3076_v5 = vld [vmem:[%s4156_s5 + $0x44] ss:$8 sps:$4 sm:$0xff]   ;;  %v3074_v6 = vld [vmem:[%s4156_s5 + $0x40] ss:$8 sps:$4 sm:$0xff]  }
  0x80   : > { %1293 = vmatprep.subr.bf16.mxu0 %v3067_v63  ;;  %v3079_v7 = vld [vmem:[%s4156_s5 + $0x54] ss:$8 sps:$4 sm:$0xff]   ;;  %v3077_v8 = vld [vmem:[%s4156_s5 + $0x50] ss:$8 sps:$4 sm:$0xff]   ;;  %v3082_v9 = vld [vmem:[%s4156_s5 + $0x64] ss:$8 sps:$4 sm:$0xff]  }
  0x81   : > { %v3080_v10 = vld [vmem:[%s4156_s5 + $0x60] ss:$8 sps:$4 sm:$0xff]   ;;  %v3085_v11 = vld [vmem:[%s4156_s5 + $0x74] ss:$8 sps:$4 sm:$0xff]   ;;  %v3083_v12 = vld [vmem:[%s4156_s5 + $0x70] ss:$8 sps:$4 sm:$0xff]  }
  0x82   : > { %937 = vmatpush1.bf16.msra.mxu1 %v3031_v27  ;;  %v3088_v13 = vld [vmem:[%s4156_s5 + $0x84] ss:$8 sps:$4 sm:$0xff]   ;;  %v3086_v14 = vld [vmem:[%s4156_s5 + $0x80] ss:$8 sps:$4 sm:$0xff]   ;;  %v3091_v15 = vld [vmem:[%s4156_s5 + $0x94] ss:$8 sps:$4 sm:$0xff]  }
  0x83   : > { %938 = vmatprep.subr.bf16.mxu1 %v3032_v28  ;;  %v3089_v16 = vld [vmem:[%s4156_s5 + $0x90] ss:$8 sps:$4 sm:$0xff]   ;;  %v3094_v17 = vld [vmem:[%s4156_s5 + $0xa4] ss:$8 sps:$4 sm:$0xff]   ;;  %v3092_v18 = vld [vmem:[%s4156_s5 + $0xa0] ss:$8 sps:$4 sm:$0xff]  }
  0x84   : > { %2619 = vmatmul.mubr.msk.bf16.gmra.mrb[8].mxu0 %vm529_vm1, %v505_v22  ;;  %v3097_v19 = vld [vmem:[%s4156_s5 + $0xb4] ss:$8 sps:$4 sm:$0xff]   ;;  %v3095_v20 = vld [vmem:[%s4156_s5 + $0xb0] ss:$8 sps:$4 sm:$0xff]   ;;  %v3100_v21 = vld [vmem:[%s4156_s5 + $0xc4] ss:$8 sps:$4 sm:$0xff]   ;;  %v514_v22 = vlaneseq }
  0x85   : > { %623 = vmatprep.mubr.bf16.mxu0 %v3385_v0  ;;  %v3098_v23 = vld [vmem:[%s4156_s5 + $0xc0] ss:$8 sps:$4 sm:$0xff]   ;;  %v3103_v24 = vld [vmem:[%s4156_s5 + $0xd4] ss:$8 sps:$4 sm:$0xff]   ;;  %v3101_v26 = vld [vmem:[%s4156_s5 + $0xd0] ss:$8 sps:$4 sm:$0xff]  }
  0x86   : > { %939 = vmatpush1.bf16.msra.mxu1 %v3034_v30  ;;  %v515_v25 = vshrl.u32 %v514_v22, 7  ;;  %v512_v28 = vld [vmem:[%s4153_s2] sm:$0x3]  ;;  %s2508_s23 = sshll.u32 %s4075_s13, 4  ;;  %s4105_s23 = int_to_ptr.vmem [resolvable:$true] %s2508_s23 }
  0x87   : > { %940 = vmatprep.subr.bf16.mxu1 %v3035_v31  ;;  %s3306_s29 = scalar_lea.vmem %s4105_s23, 1024  ;;  %p3313_p13 = scmp.lt.s32.totalorder %s4105_s23, %s3311_s15 }
  0x88   : > { %v3828_v27 = vsub.s32 0, %v515_v25  ;;  %p3307_p4 = scmp.ne.s32.totalorder %s4105_s23, %s3306_s29  ;;  %p3314_p1 = scmp.lt.s32.totalorder %s3312_s27, %s3306_s29 }
  0x8a   : > { %941 = vmatpush1.bf16.msra.mxu1 %v3037_v34  ;;  %v3836_v30 = vrot.slane %v512_v28, %v3828_v27  ;;  %p3308_p8 = pnand %p3307_p4, %p4199_p7  ;;  %p3315_p6 = por %p3314_p1, %p3313_p13 }
  0x8b   : > { %942 = vmatprep.subr.bf16.mxu1 %v3038_v35 }
  0x8c   : > { %2620 = vmatmul.mubr.msk.bf16.gmra.mrb[12].mxu0 %vm529_vm1, %v506_v29  ;;  %v3833_v29 = vsub.s32 1, %v515_v25  ;;  %p3309_p11 = pneg %p3308_p8 }
  0x8d   : > { %633 = vmatprep.mubr.bf16.mxu0 %v3385_v0 }
  0x8e   : > { %943 = vmatpush1.bf16.msra.mxu1 %v3040_v37  ;;  %v3839_v31 = vrot.slane %v512_v28, %v3833_v29  ;;  %p3316_p9 = pnand %p3315_p6, %p3309_p11 }
  0x8f   : > { %944 = vmatprep.subr.bf16.mxu1 %v3041_v38 }
  0x92   : > { %945 = vmatpush1.bf16.msra.mxu1 %v3043_v41 }
  0x93   : > { %946 = vmatprep.subr.bf16.mxu1 %v3044_v42 }
  0x94   : > { %2621 = vmatmul.mubr.msk.bf16.gmra.mrb[16].mxu0 %vm529_vm1, %v507_v36 }
  0x95   : > { %643 = vmatprep.mubr.bf16.mxu0 %v3385_v0 }
  0x96   : > { %947 = vmatpush1.bf16.msra.mxu1 %v3046_v44 }
  0x97   : > { %948 = vmatprep.subr.bf16.mxu1 %v3047_v45 }
  0x9a   : > { %949 = vmatpush1.bf16.msra.mxu1 %v3049_v48 }
  0x9b   : > { %950 = vmatprep.subr.bf16.mxu1 %v3050_v49 }
  0x9c   : > { %2622 = vmatmul.mubr.msk.bf16.gmra.mrb[20].mxu0 %vm529_vm1, %v508_v43 }
  0x9d   : > { %653 = vmatprep.mubr.bf16.mxu0 %v3385_v0 }
  0x9e   : > { %951 = vmatpush1.bf16.msra.mxu1 %v3052_v51 }
  0x9f   : > { %952 = vmatprep.subr.bf16.mxu1 %v3053_v52 }
  0xa2   : > { %953 = vmatpush1.bf16.msra.mxu1 %v3055_v56 }
  0xa3   : > { %954 = vmatprep.subr.bf16.mxu1 %v3056_v57 }
  0xa4   : > { %2623 = vmatmul.mubr.msk.bf16.gmra.mrb[24].mxu0 %vm529_vm1, %v509_v50 }
  0xa5   : > { %663 = vmatprep.mubr.bf16.mxu0 %v3385_v0  ;;  %v3065_v0 = vld [vmem:[%s4156_s5 + $0x10] ss:$8 sps:$4 sm:$0xff]  }
  0xa6   : > { %955 = vmatpush1.bf16.msra.mxu1 %v3058_v58  ;;  %1294 = vmatpush1.bf16.msra.mxu0 %v3065_v0 }
  0xa7   : > { %956 = vmatprep.subr.bf16.mxu1 %v3059_v59  ;;  %1295 = vmatprep.subr.bf16.mxu0 %v3070_v1 }
  0xaa   : > { %957 = vmatpush1.bf16.msra.mxu1 %v3061_v60  ;;  %1296 = vmatpush1.bf16.msra.mxu0 %v3068_v2 }
  0xab   : > { %1297 = vmatprep.subr.bf16.mxu0 %v3073_v3 }
  0xac   : > { %2624 = vmatmul.mubr.msk.bf16.gmra.mrb[28].mxu0 %vm529_vm1, %v510_v55 }
  0xae   : > { %1298 = vmatpush1.bf16.msra.mxu0 %v3071_v4 }
  0xaf   : > { %1299 = vmatprep.subr.bf16.mxu0 %v3076_v5 }
  0xb2   : > { %1300 = vmatpush1.bf16.msra.mxu0 %v3074_v6 }
  0xb3   : > { %1301 = vmatprep.subr.bf16.mxu0 %v3079_v7 }
  0xb6   : > { %1302 = vmatpush1.bf16.msra.mxu0 %v3077_v8 }
  0xb7   : > { %1303 = vmatprep.subr.bf16.mxu0 %v3082_v9 }
  0xba   : > { %1304 = vmatpush1.bf16.msra.mxu0 %v3080_v10 }
  0xbb   : > { %1305 = vmatprep.subr.bf16.mxu0 %v3085_v11 }
  0xbe   : > { %1306 = vmatpush1.bf16.msra.mxu0 %v3083_v12 }
  0xbf   : > { %1307 = vmatprep.subr.bf16.mxu0 %v3088_v13 }
  0xc2   : > { %1308 = vmatpush1.bf16.msra.mxu0 %v3086_v14 }
  0xc3   : > { %1309 = vmatprep.subr.bf16.mxu0 %v3091_v15 }
  0xc6   : > { %1310 = vmatpush1.bf16.msra.mxu0 %v3089_v16 }
  0xc7   : > { %1311 = vmatprep.subr.bf16.mxu0 %v3094_v17 }
  0xca   : > { %1312 = vmatpush1.bf16.msra.mxu0 %v3092_v18 }
  0xcb   : > { %1313 = vmatprep.subr.bf16.mxu0 %v3097_v19 }
  0xce   : > { %1314 = vmatpush1.bf16.msra.mxu0 %v3095_v20 }
  0xcf   : > { %1315 = vmatprep.subr.bf16.mxu0 %v3100_v21 }
  0xd2   : > { %1316 = vmatpush1.bf16.msra.mxu0 %v3098_v23 }
  0xd3   : > { %1317 = vmatprep.subr.bf16.mxu0 %v3103_v24 }
  0xd6   : > { %1318 = vmatpush1.bf16.msra.mxu0 %v3101_v26 }
 0x147   : > { %v595_v32 = vpop.f32.mrb[0].mxu0 }
 0x148   : > { %v596_v33 = vadd.f32 %v595_v32, %v3836_v30  ;;  %v597_v34 = vpop.f32.mrb[1].mxu0 }
 0x149   : > { %v598_v35 = vadd.f32 %v597_v34, %v3839_v31  ;;  %v599_v36 = vpop.f32.mrb[2].mxu0 }
 0x14a   : > { %v600_v37 = vadd.f32 %v599_v36, %v3836_v30  ;;  %v601_v38 = vpop.f32.mrb[3].mxu0  ;;  %v674_v40 = vmax.f32 %v596_v33, 0.0 }
 0x14b   : > { %v602_v39 = vadd.f32 %v601_v38, %v3839_v31  ;;  %v675_v42 = vmax.f32 %v598_v35, 0.0 }
 0x14c   : > { %v676_v41 = vmax.f32 %v600_v37, 0.0 }
 0x14d   : > { %v677_v43 = vmax.f32 %v602_v39, 0.0 }
 0x14e   : > { %v706_v44 = vpack.c.bf16 %v676_v41, %v674_v40 }
 0x14f   : > { %v605_v45 = vpop.f32.mrb[4].mxu0  ;;  %v707_v46 = vpack.c.bf16 %v677_v43, %v675_v42 }
 0x150   : > { %v606_v47 = vadd.f32 %v605_v45, %v3836_v30  ;;  %v607_v48 = vpop.f32.mrb[5].mxu0 }
 0x151   : > { %v608_v49 = vadd.f32 %v607_v48, %v3839_v31  ;;  %v609_v50 = vpop.f32.mrb[6].mxu0  ;;  %958 = vmatprep.mubr.bf16.mxu1 %v707_v46 }
 0x152   : > { %v610_v51 = vadd.f32 %v609_v50, %v3836_v30  ;;  %v611_v52 = vpop.f32.mrb[7].mxu0  ;;  %959 = vmatmul.mubr.bf16.vlgmr.msra.gmra.mrb[0].mxu1 %v706_v44  ;;  %v678_v54 = vmax.f32 %v606_v47, 0.0 }
 0x153   : > { %v612_v53 = vadd.f32 %v611_v52, %v3839_v31  ;;  %v679_v56 = vmax.f32 %v608_v49, 0.0 }
 0x154   : > { %v680_v55 = vmax.f32 %v610_v51, 0.0 }
 0x155   : > { %v681_v57 = vmax.f32 %v612_v53, 0.0 }
 0x156   : > { %v708_v58 = vpack.c.bf16 %v680_v55, %v678_v54 }
 0x157   : > { %v709_v59 = vpack.c.bf16 %v681_v57, %v679_v56  ;;  %v615_v60 = vpop.f32.mrb[8].mxu0 }
 0x158   : > { %v616_v61 = vadd.f32 %v615_v60, %v3836_v30  ;;  %v617_v62 = vpop.f32.mrb[9].mxu0 }
 0x159   : > { %v618_v63 = vadd.f32 %v617_v62, %v3839_v31  ;;  %v619_v0 = vpop.f32.mrb[10].mxu0  ;;  %968 = vmatprep.mubr.bf16.mxu1 %v709_v59 }
 0x15a   : > { %v620_v1 = vadd.f32 %v619_v0, %v3836_v30  ;;  %v621_v2 = vpop.f32.mrb[11].mxu0  ;;  %969 = vmatmul.mubr.bf16.gmra.mrb[4].mxu1 %v708_v58  ;;  %v682_v4 = vmax.f32 %v616_v61, 0.0 }
 0x15b   : > { %v622_v3 = vadd.f32 %v621_v2, %v3839_v31  ;;  %v683_v6 = vmax.f32 %v618_v63, 0.0 }
 0x15c   : > { %v684_v5 = vmax.f32 %v620_v1, 0.0 }
 0x15d   : > { %v685_v7 = vmax.f32 %v622_v3, 0.0 }
 0x15e   : > { %v710_v8 = vpack.c.bf16 %v684_v5, %v682_v4 }
 0x15f   : > { %v711_v9 = vpack.c.bf16 %v685_v7, %v683_v6  ;;  %v625_v10 = vpop.f32.mrb[12].mxu0 }
 0x160   : > { %v626_v11 = vadd.f32 %v625_v10, %v3836_v30  ;;  %v627_v12 = vpop.f32.mrb[13].mxu0 }
 0x161   : > { %v628_v13 = vadd.f32 %v627_v12, %v3839_v31  ;;  %v629_v14 = vpop.f32.mrb[14].mxu0  ;;  %978 = vmatprep.mubr.bf16.mxu1 %v711_v9 }
 0x162   : > { %v630_v15 = vadd.f32 %v629_v14, %v3836_v30  ;;  %v631_v16 = vpop.f32.mrb[15].mxu0  ;;  %979 = vmatmul.mubr.bf16.gmra.mrb[8].mxu1 %v710_v8  ;;  %v686_v18 = vmax.f32 %v626_v11, 0.0 }
 0x163   : > { %v632_v17 = vadd.f32 %v631_v16, %v3839_v31  ;;  %v687_v20 = vmax.f32 %v628_v13, 0.0 }
 0x164   : > { %v688_v19 = vmax.f32 %v630_v15, 0.0 }
 0x165   : > { %v689_v21 = vmax.f32 %v632_v17, 0.0 }
 0x166   : > { %v712_v22 = vpack.c.bf16 %v688_v19, %v686_v18 }
 0x167   : > { %v713_v23 = vpack.c.bf16 %v689_v21, %v687_v20  ;;  %v635_v24 = vpop.f32.mrb[16].mxu0  ;;  %v3106_v20 = vld [vmem:[%s4156_s5 + $0xe4] ss:$8 sps:$4 sm:$0xff]   ;;  %v3107_v21 = vld [vmem:[%s4156_s5 + $0xf0] ss:$8 sps:$4 sm:$0xff]  }
 0x168   : > { %v636_v25 = vadd.f32 %v635_v24, %v3836_v30  ;;  %v637_v26 = vpop.f32.mrb[17].mxu0  ;;  %1319 = vmatprep.subr.bf16.mxu0 %v3106_v20  ;;  %v3115_v24 = vld [vmem:[#allocation2 + $0x14] ss:$8 sps:$4 sm:$0xff]  }
 0x169   : > { %v638_v28 = vadd.f32 %v637_v26, %v3839_v31  ;;  %v639_v32 = vpop.f32.mrb[18].mxu0  ;;  %988 = vmatprep.mubr.bf16.mxu1 %v713_v23  ;;  %v3112_v23 = vld [vmem:[#allocation2 + $0x4] ss:$8 sps:$4 sm:$0xff]  }
 0x16a   : > { %v640_v33 = vadd.f32 %v639_v32, %v3836_v30  ;;  %v641_v34 = vpop.f32.mrb[19].mxu0  ;;  %989 = vmatmul.mubr.bf16.gmra.mrb[12].mxu1 %v712_v22  ;;  %v690_v36 = vmax.f32 %v636_v25, 0.0  ;;  %v3110_v22 = vld [vmem:[#allocation2] ss:$8 sps:$4 sm:$0xff]   ;;  %1656 = vmatprep.subr.bf16.mxu1 %v3112_v23  ;;  %v3113_v25 = vld [vmem:[#allocation2 + $0x10] ss:$8 sps:$4 sm:$0xff]  }
 0x16b   : > { %v642_v35 = vadd.f32 %v641_v34, %v3839_v31  ;;  %v691_v38 = vmax.f32 %v638_v28, 0.0  ;;  %1657 = vmatpush1.bf16.msra.mxu1 %v3110_v22  ;;  %v3118_v26 = vld [vmem:[#allocation2 + $0x24] ss:$8 sps:$4 sm:$0xff]   ;;  %v3116_v28 = vld [vmem:[#allocation2 + $0x20] ss:$8 sps:$4 sm:$0xff]  }
 0x16c   : > { %v692_v37 = vmax.f32 %v640_v33, 0.0  ;;  %1658 = vmatprep.subr.bf16.mxu1 %v3115_v24  ;;  %v3121_v32 = vld [vmem:[#allocation2 + $0x34] ss:$8 sps:$4 sm:$0xff]   ;;  %v3119_v33 = vld [vmem:[#allocation2 + $0x30] ss:$8 sps:$4 sm:$0xff]  }
 0x16d   : > { %v693_v39 = vmax.f32 %v642_v35, 0.0  ;;  %v3124_v34 = vld [vmem:[#allocation2 + $0x44] ss:$8 sps:$4 sm:$0xff]   ;;  %v3122_v35 = vld [vmem:[#allocation2 + $0x40] ss:$8 sps:$4 sm:$0xff]  }
 0x16e   : > { %v714_v40 = vpack.c.bf16 %v692_v37, %v690_v36  ;;  %v3127_v36 = vld [vmem:[#allocation2 + $0x54] ss:$8 sps:$4 sm:$0xff]   ;;  %v3125_v37 = vld [vmem:[#allocation2 + $0x50] ss:$8 sps:$4 sm:$0xff]  }
 0x16f   : > { %v715_v41 = vpack.c.bf16 %v693_v39, %v691_v38  ;;  %v645_v42 = vpop.f32.mrb[20].mxu0  ;;  %1659 = vmatpush1.bf16.msra.mxu1 %v3113_v25  ;;  %v3130_v38 = vld [vmem:[#allocation2 + $0x64] ss:$8 sps:$4 sm:$0xff]   ;;  %v3128_v39 = vld [vmem:[#allocation2 + $0x60] ss:$8 sps:$4 sm:$0xff]  }
 0x170   : > { %v646_v43 = vadd.f32 %v645_v42, %v3836_v30  ;;  %v647_v44 = vpop.f32.mrb[21].mxu0  ;;  %1660 = vmatprep.subr.bf16.mxu1 %v3118_v26  ;;  %v3136_v42 = vld [vmem:[#allocation2 + $0x84] ss:$8 sps:$4 sm:$0xff]  }
 0x171   : > { %v648_v45 = vadd.f32 %v647_v44, %v3839_v31  ;;  %v649_v46 = vpop.f32.mrb[22].mxu0  ;;  %998 = vmatprep.mubr.bf16.mxu1 %v715_v41  ;;  %v3131_v41 = vld [vmem:[#allocation2 + $0x70] ss:$8 sps:$4 sm:$0xff]   ;;  %v3139_v44 = vld [vmem:[#allocation2 + $0x94] ss:$8 sps:$4 sm:$0xff]  }
 0x172   : > { %v650_v47 = vadd.f32 %v649_v46, %v3836_v30  ;;  %v651_v48 = vpop.f32.mrb[23].mxu0  ;;  %999 = vmatmul.mubr.bf16.gmra.mrb[16].mxu1 %v714_v40  ;;  %v694_v50 = vmax.f32 %v646_v43, 0.0  ;;  %v3133_v40 = vld [vmem:[#allocation2 + $0x74] ss:$8 sps:$4 sm:$0xff]   ;;  %v3134_v43 = vld [vmem:[#allocation2 + $0x80] ss:$8 sps:$4 sm:$0xff]  }
 0x173   : > { %v652_v49 = vadd.f32 %v651_v48, %v3839_v31  ;;  %v695_v52 = vmax.f32 %v648_v45, 0.0  ;;  %1661 = vmatpush1.bf16.msra.mxu1 %v3116_v28  ;;  %v3137_v45 = vld [vmem:[#allocation2 + $0x90] ss:$8 sps:$4 sm:$0xff]   ;;  %v3142_v46 = vld [vmem:[#allocation2 + $0xa4] ss:$8 sps:$4 sm:$0xff]  }
 0x174   : > { %v696_v51 = vmax.f32 %v650_v47, 0.0  ;;  %1662 = vmatprep.subr.bf16.mxu1 %v3121_v32  ;;  %v3140_v47 = vld [vmem:[#allocation2 + $0xa0] ss:$8 sps:$4 sm:$0xff]   ;;  %v3145_v48 = vld [vmem:[#allocation2 + $0xb4] ss:$8 sps:$4 sm:$0xff]  }
 0x175   : > { %v697_v53 = vmax.f32 %v652_v49, 0.0  ;;  %v3143_v49 = vld [vmem:[#allocation2 + $0xb0] ss:$8 sps:$4 sm:$0xff]  }
 0x176   : > { %v716_v54 = vpack.c.bf16 %v696_v51, %v694_v50  ;;  %v3148_v50 = vld [vmem:[#allocation2 + $0xc4] ss:$8 sps:$4 sm:$0xff]   ;;  %v3146_v51 = vld [vmem:[#allocation2 + $0xc0] ss:$8 sps:$4 sm:$0xff]  }
 0x177   : > { %v717_v55 = vpack.c.bf16 %v697_v53, %v695_v52  ;;  %v655_v56 = vpop.f32.mrb[24].mxu0  ;;  %1663 = vmatpush1.bf16.msra.mxu1 %v3119_v33  ;;  %v3151_v52 = vld [vmem:[#allocation2 + $0xd4] ss:$8 sps:$4 sm:$0xff]   ;;  %v3149_v53 = vld [vmem:[#allocation2 + $0xd0] ss:$8 sps:$4 sm:$0xff]  }
 0x178   : > { %v656_v57 = vadd.f32 %v655_v56, %v3836_v30  ;;  %v657_v58 = vpop.f32.mrb[25].mxu0  ;;  %1664 = vmatprep.subr.bf16.mxu1 %v3124_v34 }
 0x179   : > { %v658_v59 = vadd.f32 %v657_v58, %v3839_v31  ;;  %v659_v60 = vpop.f32.mrb[26].mxu0  ;;  %1008 = vmatprep.mubr.bf16.mxu1 %v717_v55 }
 0x17a   : > { %v660_v61 = vadd.f32 %v659_v60, %v3836_v30  ;;  %v661_v62 = vpop.f32.mrb[27].mxu0  ;;  %1009 = vmatmul.mubr.bf16.gmra.mrb[20].mxu1 %v716_v54  ;;  %v698_v0 = vmax.f32 %v656_v57, 0.0  ;;  %v754_v54 = vld [vmem:[%s4155_s4] sm:$0x3] }
 0x17b   : > { %v662_v63 = vadd.f32 %v661_v62, %v3839_v31  ;;  %v699_v2 = vmax.f32 %v658_v59, 0.0  ;;  %1665 = vmatpush1.bf16.msra.mxu1 %v3122_v35  ;;  %v3889_v55 = vrot.slane %v754_v54, %v3828_v27  ;;  %v3892_v56 = vrot.slane %v754_v54, %v3833_v29 }
 0x17c   : > { %v700_v1 = vmax.f32 %v660_v61, 0.0  ;;  %1666 = vmatprep.subr.bf16.mxu1 %v3127_v36 }
 0x17d   : > { %v701_v3 = vmax.f32 %v662_v63, 0.0 }
 0x17e   : > { %v718_v4 = vpack.c.bf16 %v700_v1, %v698_v0 }
 0x17f   : > { %v719_v5 = vpack.c.bf16 %v701_v3, %v699_v2  ;;  %v665_v6 = vpop.f32.mrb[28].mxu0  ;;  %1667 = vmatpush1.bf16.msra.mxu1 %v3125_v37 }
 0x180   : > { %v666_v7 = vadd.f32 %v665_v6, %v3836_v30  ;;  %v667_v8 = vpop.f32.mrb[29].mxu0  ;;  %1668 = vmatprep.subr.bf16.mxu1 %v3130_v38 }
 0x181   : > { %v668_v9 = vadd.f32 %v667_v8, %v3839_v31  ;;  %v669_v10 = vpop.f32.mrb[30].mxu0  ;;  %1018 = vmatprep.mubr.bf16.mxu1 %v719_v5 }
 0x182   : > { %v670_v11 = vadd.f32 %v669_v10, %v3836_v30  ;;  %v671_v12 = vpop.f32.mrb[31].mxu0  ;;  %1019 = vmatmul.mubr.bf16.gmra.mrb[24].mxu1 %v718_v4  ;;  %v702_v14 = vmax.f32 %v666_v7, 0.0  ;;  %v3104_v30 = vld [vmem:[%s4156_s5 + $0xe0] ss:$8 sps:$4 sm:$0xff]  }
 0x183   : > { %v672_v13 = vadd.f32 %v671_v12, %v3839_v31  ;;  %v703_v16 = vmax.f32 %v668_v9, 0.0  ;;  %1320 = vmatpush1.bf16.msra.mxu0 %v3104_v30  ;;  %v3109_v31 = vld [vmem:[%s4156_s5 + $0xf4] ss:$8 sps:$4 sm:$0xff]   ;;  %1669 = vmatpush1.bf16.msra.mxu1 %v3128_v39 }
 0x184   : > { %v704_v15 = vmax.f32 %v670_v11, 0.0  ;;  %1321 = vmatprep.subr.bf16.mxu0 %v3109_v31  ;;  %1670 = vmatprep.subr.bf16.mxu1 %v3133_v40 }
 0x185   : > { %v705_v17 = vmax.f32 %v672_v13, 0.0 }
 0x186   : > { %v720_v18 = vpack.c.bf16 %v704_v15, %v702_v14 }
 0x187   : > { %v721_v19 = vpack.c.bf16 %v705_v17, %v703_v16  ;;  %1322 = vmatpush1.bf16.msra.mxu0 %v3107_v21  ;;  %1671 = vmatpush1.bf16.msra.mxu1 %v3131_v41 }
 0x188   : > { %1672 = vmatprep.subr.bf16.mxu1 %v3136_v42 }
 0x189   : > { %1028 = vmatprep.mubr.bf16.mxu1 %v721_v19 }
 0x18a   : > { %1029 = vmatmul.mubr.bf16.gmra.mrb[28].mxu1 %v720_v18 }
 0x18b   : > { %1673 = vmatpush1.bf16.msra.mxu1 %v3134_v43 }
 0x18c   : > { %1674 = vmatprep.subr.bf16.mxu1 %v3139_v44 }
 0x18f   : > { %1675 = vmatpush1.bf16.msra.mxu1 %v3137_v45 }
 0x190   : > { %1676 = vmatprep.subr.bf16.mxu1 %v3142_v46 }
 0x193   : > { %1677 = vmatpush1.bf16.msra.mxu1 %v3140_v47 }
 0x194   : > { %1678 = vmatprep.subr.bf16.mxu1 %v3145_v48 }
 0x197   : > { %1679 = vmatpush1.bf16.msra.mxu1 %v3143_v49 }
 0x198   : > { %1680 = vmatprep.subr.bf16.mxu1 %v3148_v50 }
 0x19b   : > { %1681 = vmatpush1.bf16.msra.mxu1 %v3146_v51 }
 0x19c   : > { %1682 = vmatprep.subr.bf16.mxu1 %v3151_v52 }
 0x19f   : > { %1683 = vmatpush1.bf16.msra.mxu1 %v3149_v53 }
 0x225   : > { %v960_v57 = vpop.f32.mrb[0].mxu1 }
 0x226   : > { %v961_v58 = vadd.f32 %v960_v57, %v3889_v55  ;;  %v962_v59 = vpop.f32.mrb[1].mxu1 }
 0x227   : > { %v963_v60 = vadd.f32 %v962_v59, %v3892_v56  ;;  %v964_v61 = vpop.f32.mrb[2].mxu1 }
 0x228   : > { %v965_v62 = vadd.f32 %v964_v61, %v3889_v55  ;;  %v966_v63 = vpop.f32.mrb[3].mxu1  ;;  %v1039_v1 = vmax.f32 %v961_v58, 0.0 }
 0x229   : > { %v967_v0 = vadd.f32 %v966_v63, %v3892_v56  ;;  %v1040_v3 = vmax.f32 %v963_v60, 0.0 }
 0x22a   : > { %v1041_v2 = vmax.f32 %v965_v62, 0.0 }
 0x22b   : > { %v1042_v4 = vmax.f32 %v967_v0, 0.0 }
 0x22c   : > { %v1071_v5 = vpack.c.bf16 %v1041_v2, %v1039_v1 }
 0x22d   : > { %v1072_v6 = vpack.c.bf16 %v1042_v4, %v1040_v3  ;;  %v970_v7 = vpop.f32.mrb[4].mxu1 }
 0x22e   : > { %v971_v8 = vadd.f32 %v970_v7, %v3889_v55  ;;  %v972_v9 = vpop.f32.mrb[5].mxu1 }
 0x22f   : > { %v973_v10 = vadd.f32 %v972_v9, %v3892_v56  ;;  %v974_v11 = vpop.f32.mrb[6].mxu1  ;;  %1323 = vmatprep.mubr.bf16.mxu0 %v1072_v6 }
 0x230   : > { %v975_v12 = vadd.f32 %v974_v11, %v3889_v55  ;;  %v976_v13 = vpop.f32.mrb[7].mxu1  ;;  %1324 = vmatmul.mubr.bf16.vlgmr.msra.gmra.mrb[32].mxu0 %v1071_v5  ;;  %v1043_v15 = vmax.f32 %v971_v8, 0.0 }
 0x231   : > { %v977_v14 = vadd.f32 %v976_v13, %v3892_v56  ;;  %v1044_v17 = vmax.f32 %v973_v10, 0.0 }
 0x232   : > { %v1045_v16 = vmax.f32 %v975_v12, 0.0 }
 0x233   : > { %v1046_v18 = vmax.f32 %v977_v14, 0.0 }
 0x234   : > { %v1073_v19 = vpack.c.bf16 %v1045_v16, %v1043_v15 }
 0x235   : > { %v1074_v20 = vpack.c.bf16 %v1046_v18, %v1044_v17  ;;  %v980_v30 = vpop.f32.mrb[8].mxu1 }
 0x236   : > { %v981_v31 = vadd.f32 %v980_v30, %v3889_v55  ;;  %v982_v21 = vpop.f32.mrb[9].mxu1 }
 0x237   : > { %v983_v22 = vadd.f32 %v982_v21, %v3892_v56  ;;  %v984_v23 = vpop.f32.mrb[10].mxu1  ;;  %1333 = vmatprep.mubr.bf16.mxu0 %v1074_v20 }
 0x238   : > { %v985_v24 = vadd.f32 %v984_v23, %v3889_v55  ;;  %v986_v25 = vpop.f32.mrb[11].mxu1  ;;  %1334 = vmatmul.mubr.bf16.gmra.mrb[36].mxu0 %v1073_v19  ;;  %v1047_v28 = vmax.f32 %v981_v31, 0.0 }
 0x239   : > { %v987_v26 = vadd.f32 %v986_v25, %v3892_v56  ;;  %v1048_v33 = vmax.f32 %v983_v22, 0.0 }
 0x23a   : > { %v1049_v32 = vmax.f32 %v985_v24, 0.0 }
 0x23b   : > { %v1050_v34 = vmax.f32 %v987_v26, 0.0 }
 0x23c   : > { %v1075_v35 = vpack.c.bf16 %v1049_v32, %v1047_v28 }
 0x23d   : > { %v1076_v36 = vpack.c.bf16 %v1050_v34, %v1048_v33  ;;  %v990_v37 = vpop.f32.mrb[12].mxu1 }
 0x23e   : > { %v991_v38 = vadd.f32 %v990_v37, %v3889_v55  ;;  %v992_v39 = vpop.f32.mrb[13].mxu1 }
 0x23f   : > { %v993_v40 = vadd.f32 %v992_v39, %v3892_v56  ;;  %v994_v41 = vpop.f32.mrb[14].mxu1  ;;  %1343 = vmatprep.mubr.bf16.mxu0 %v1076_v36 }
 0x240   : > { %v995_v42 = vadd.f32 %v994_v41, %v3889_v55  ;;  %v996_v43 = vpop.f32.mrb[15].mxu1  ;;  %1344 = vmatmul.mubr.bf16.gmra.mrb[40].mxu0 %v1075_v35  ;;  %v1051_v45 = vmax.f32 %v991_v38, 0.0 }
 0x241   : > { %v997_v44 = vadd.f32 %v996_v43, %v3892_v56  ;;  %v1052_v47 = vmax.f32 %v993_v40, 0.0 }
 0x242   : > { %v1053_v46 = vmax.f32 %v995_v42, 0.0 }
 0x243   : > { %v1054_v48 = vmax.f32 %v997_v44, 0.0 }
 0x244   : > { %v1077_v49 = vpack.c.bf16 %v1053_v46, %v1051_v45 }
 0x245   : > { %v1078_v50 = vpack.c.bf16 %v1054_v48, %v1052_v47  ;;  %v1000_v51 = vpop.f32.mrb[16].mxu1  ;;  %v3154_v47 = vld [vmem:[#allocation2 + $0xe4] ss:$8 sps:$4 sm:$0xff]   ;;  %v3152_v48 = vld [vmem:[#allocation2 + $0xe0] ss:$8 sps:$4 sm:$0xff]  }
 0x246   : > { %v1001_v52 = vadd.f32 %v1000_v51, %v3889_v55  ;;  %v1002_v53 = vpop.f32.mrb[17].mxu1  ;;  %1684 = vmatprep.subr.bf16.mxu1 %v3154_v47  ;;  %v3160_v51 = vld [vmem:[#allocation5 + $0x4] ss:$8 sps:$4 sm:$0xff]  }
 0x247   : > { %v1003_v54 = vadd.f32 %v1002_v53, %v3892_v56  ;;  %v1004_v57 = vpop.f32.mrb[18].mxu1  ;;  %1353 = vmatprep.mubr.bf16.mxu0 %v1078_v50  ;;  %1685 = vmatpush1.bf16.msra.mxu1 %v3152_v48  ;;  %v3155_v50 = vld [vmem:[#allocation2 + $0xf0] ss:$8 sps:$4 sm:$0xff]   ;;  %v3166_v53 = vld [vmem:[#allocation5 + $0x24] ss:$8 sps:$4 sm:$0xff]  }
 0x248   : > { %v1005_v58 = vadd.f32 %v1004_v57, %v3889_v55  ;;  %v1006_v59 = vpop.f32.mrb[19].mxu1  ;;  %1354 = vmatmul.mubr.bf16.gmra.mrb[44].mxu0 %v1077_v49  ;;  %v1055_v61 = vmax.f32 %v1001_v52, 0.0  ;;  %v3157_v49 = vld [vmem:[#allocation2 + $0xf4] ss:$8 sps:$4 sm:$0xff]   ;;  %2021 = vmatprep.subr.bf16.mxu0 %v3160_v51 }
 0x249   : > { %v1007_v60 = vadd.f32 %v1006_v59, %v3892_v56  ;;  %v1056_v63 = vmax.f32 %v1003_v54, 0.0  ;;  %1686 = vmatprep.subr.bf16.mxu1 %v3157_v49  ;;  %v3163_v52 = vld [vmem:[#allocation5 + $0x14] ss:$8 sps:$4 sm:$0xff]   ;;  %v3164_v54 = vld [vmem:[#allocation5 + $0x20] ss:$8 sps:$4 sm:$0xff]  }
 0x24a   : > { %v1057_v62 = vmax.f32 %v1005_v58, 0.0  ;;  %v3169_v57 = vld [vmem:[#allocation5 + $0x34] ss:$8 sps:$4 sm:$0xff]   ;;  %v3167_v58 = vld [vmem:[#allocation5 + $0x30] ss:$8 sps:$4 sm:$0xff]  }
 0x24b   : > { %v1058_v0 = vmax.f32 %v1007_v60, 0.0  ;;  %1687 = vmatpush1.bf16.msra.mxu1 %v3155_v50  ;;  %v3172_v59 = vld [vmem:[#allocation5 + $0x44] ss:$8 sps:$4 sm:$0xff]   ;;  %v3170_v60 = vld [vmem:[#allocation5 + $0x40] ss:$8 sps:$4 sm:$0xff]  }
 0x24c   : > { %v1079_v1 = vpack.c.bf16 %v1057_v62, %v1055_v61  ;;  %v3175_v61 = vld [vmem:[#allocation5 + $0x54] ss:$8 sps:$4 sm:$0xff]   ;;  %v3173_v62 = vld [vmem:[#allocation5 + $0x50] ss:$8 sps:$4 sm:$0xff]  }
 0x24d   : > { %v1080_v2 = vpack.c.bf16 %v1058_v0, %v1056_v63  ;;  %v1010_v3 = vpop.f32.mrb[20].mxu1  ;;  %v3178_v63 = vld [vmem:[#allocation5 + $0x64] ss:$8 sps:$4 sm:$0xff]   ;;  %v3176_v0 = vld [vmem:[#allocation5 + $0x60] ss:$8 sps:$4 sm:$0xff]  }
 0x24e   : > { %v1011_v4 = vadd.f32 %v1010_v3, %v3889_v55  ;;  %v1012_v5 = vpop.f32.mrb[21].mxu1  ;;  %v3184_v3 = vld [vmem:[#allocation5 + $0x84] ss:$8 sps:$4 sm:$0xff]  }
 0x24f   : > { %v1013_v6 = vadd.f32 %v1012_v5, %v3892_v56  ;;  %v1014_v7 = vpop.f32.mrb[22].mxu1  ;;  %1363 = vmatprep.mubr.bf16.mxu0 %v1080_v2  ;;  %v3179_v2 = vld [vmem:[#allocation5 + $0x70] ss:$8 sps:$4 sm:$0xff]   ;;  %v3187_v5 = vld [vmem:[#allocation5 + $0x94] ss:$8 sps:$4 sm:$0xff]  }
 0x250   : > { %v1015_v8 = vadd.f32 %v1014_v7, %v3889_v55  ;;  %v1016_v9 = vpop.f32.mrb[23].mxu1  ;;  %1364 = vmatmul.mubr.bf16.gmra.mrb[48].mxu0 %v1079_v1  ;;  %v1059_v11 = vmax.f32 %v1011_v4, 0.0  ;;  %v3181_v1 = vld [vmem:[#allocation5 + $0x74] ss:$8 sps:$4 sm:$0xff]   ;;  %v3182_v4 = vld [vmem:[#allocation5 + $0x80] ss:$8 sps:$4 sm:$0xff]  }
 0x251   : > { %v1017_v10 = vadd.f32 %v1016_v9, %v3892_v56  ;;  %v1060_v13 = vmax.f32 %v1013_v6, 0.0  ;;  %v3185_v6 = vld [vmem:[#allocation5 + $0x90] ss:$8 sps:$4 sm:$0xff]   ;;  %v3190_v7 = vld [vmem:[#allocation5 + $0xa4] ss:$8 sps:$4 sm:$0xff]  }
 0x252   : > { %v1061_v12 = vmax.f32 %v1015_v8, 0.0  ;;  %v3188_v8 = vld [vmem:[#allocation5 + $0xa0] ss:$8 sps:$4 sm:$0xff]   ;;  %v3193_v9 = vld [vmem:[#allocation5 + $0xb4] ss:$8 sps:$4 sm:$0xff]  }
 0x253   : > { %v1062_v14 = vmax.f32 %v1017_v10, 0.0  ;;  %v3191_v10 = vld [vmem:[#allocation5 + $0xb0] ss:$8 sps:$4 sm:$0xff]  }
 0x254   : > { %v1081_v15 = vpack.c.bf16 %v1061_v12, %v1059_v11  ;;  %v3196_v11 = vld [vmem:[#allocation5 + $0xc4] ss:$8 sps:$4 sm:$0xff]   ;;  %v3194_v12 = vld [vmem:[#allocation5 + $0xc0] ss:$8 sps:$4 sm:$0xff]  }
 0x255   : > { %v1082_v16 = vpack.c.bf16 %v1062_v14, %v1060_v13  ;;  %v1020_v17 = vpop.f32.mrb[24].mxu1  ;;  %v3199_v13 = vld [vmem:[#allocation5 + $0xd4] ss:$8 sps:$4 sm:$0xff]   ;;  %v3197_v14 = vld [vmem:[#allocation5 + $0xd0] ss:$8 sps:$4 sm:$0xff]  }
 0x256   : > { %v1021_v18 = vadd.f32 %v1020_v17, %v3889_v55  ;;  %v1022_v19 = vpop.f32.mrb[25].mxu1 }
 0x257   : > { %v1023_v20 = vadd.f32 %v1022_v19, %v3892_v56  ;;  %v1024_v30 = vpop.f32.mrb[26].mxu1  ;;  %1373 = vmatprep.mubr.bf16.mxu0 %v1082_v16 }
 0x258   : > { %v1025_v31 = vadd.f32 %v1024_v30, %v3889_v55  ;;  %v1026_v21 = vpop.f32.mrb[27].mxu1  ;;  %1374 = vmatmul.mubr.bf16.gmra.mrb[52].mxu0 %v1081_v15  ;;  %v1063_v23 = vmax.f32 %v1021_v18, 0.0  ;;  %v1119_v15 = vld [vmem:[%s4157_s6] sm:$0x3] }
 0x259   : > { %v1027_v22 = vadd.f32 %v1026_v21, %v3892_v56  ;;  %v1064_v25 = vmax.f32 %v1023_v20, 0.0  ;;  %v3930_v16 = vrot.slane %v1119_v15, %v3828_v27  ;;  %v3933_v17 = vrot.slane %v1119_v15, %v3833_v29 }
 0x25a   : > { %v1065_v24 = vmax.f32 %v1025_v31, 0.0 }
 0x25b   : > { %v1066_v26 = vmax.f32 %v1027_v22, 0.0 }
 0x25c   : > { %v1083_v28 = vpack.c.bf16 %v1065_v24, %v1063_v23 }
 0x25d   : > { %v1084_v32 = vpack.c.bf16 %v1066_v26, %v1064_v25  ;;  %v1030_v33 = vpop.f32.mrb[28].mxu1 }
 0x25e   : > { %v1031_v34 = vadd.f32 %v1030_v33, %v3889_v55  ;;  %v1032_v35 = vpop.f32.mrb[29].mxu1 }
 0x25f   : > { %v1033_v36 = vadd.f32 %v1032_v35, %v3892_v56  ;;  %v1034_v37 = vpop.f32.mrb[30].mxu1  ;;  %1383 = vmatprep.mubr.bf16.mxu0 %v1084_v32 }
 0x260   : > { %v1035_v38 = vadd.f32 %v1034_v37, %v3889_v55  ;;  %v1036_v39 = vpop.f32.mrb[31].mxu1  ;;  %1384 = vmatmul.mubr.bf16.gmra.mrb[56].mxu0 %v1083_v28  ;;  %v1067_v41 = vmax.f32 %v1031_v34, 0.0  ;;  %v3158_v55 = vld [vmem:[#allocation5] ss:$8 sps:$4 sm:$0xff]  }
 0x261   : > { %v1037_v40 = vadd.f32 %v1036_v39, %v3892_v56  ;;  %v1068_v43 = vmax.f32 %v1033_v36, 0.0  ;;  %2022 = vmatpush1.bf16.msra.mxu0 %v3158_v55  ;;  %v3161_v56 = vld [vmem:[#allocation5 + $0x10] ss:$8 sps:$4 sm:$0xff]  }
 0x262   : > { %v1069_v42 = vmax.f32 %v1035_v38, 0.0  ;;  %2023 = vmatprep.subr.bf16.mxu0 %v3163_v52 }
 0x263   : > { %v1070_v44 = vmax.f32 %v1037_v40, 0.0 }
 0x264   : > { %v1085_v45 = vpack.c.bf16 %v1069_v42, %v1067_v41 }
 0x265   : > { %v1086_v46 = vpack.c.bf16 %v1070_v44, %v1068_v43  ;;  %2024 = vmatpush1.bf16.msra.mxu0 %v3161_v56 }
 0x266   : > { %2025 = vmatprep.subr.bf16.mxu0 %v3166_v53 }
 0x267   : > { %1393 = vmatprep.mubr.bf16.mxu0 %v1086_v46 }
 0x268   : > { %1394 = vmatmul.mubr.bf16.gmra.mrb[60].mxu0 %v1085_v45 }
 0x269   : > { %2026 = vmatpush1.bf16.msra.mxu0 %v3164_v54 }
 0x26a   : > { %2027 = vmatprep.subr.bf16.mxu0 %v3169_v57 }
 0x26d   : > { %2028 = vmatpush1.bf16.msra.mxu0 %v3167_v58 }
 0x26e   : > { %2029 = vmatprep.subr.bf16.mxu0 %v3172_v59 }
 0x271   : > { %2030 = vmatpush1.bf16.msra.mxu0 %v3170_v60 }
 0x272   : > { %2031 = vmatprep.subr.bf16.mxu0 %v3175_v61 }
 0x275   : > { %2032 = vmatpush1.bf16.msra.mxu0 %v3173_v62 }
 0x276   : > { %2033 = vmatprep.subr.bf16.mxu0 %v3178_v63 }
 0x279   : > { %2034 = vmatpush1.bf16.msra.mxu0 %v3176_v0 }
 0x27a   : > { %2035 = vmatprep.subr.bf16.mxu0 %v3181_v1 }
 0x27d   : > { %2036 = vmatpush1.bf16.msra.mxu0 %v3179_v2 }
 0x27e   : > { %2037 = vmatprep.subr.bf16.mxu0 %v3184_v3 }
 0x281   : > { %2038 = vmatpush1.bf16.msra.mxu0 %v3182_v4 }
 0x282   : > { %2039 = vmatprep.subr.bf16.mxu0 %v3187_v5 }
 0x285   : > { %2040 = vmatpush1.bf16.msra.mxu0 %v3185_v6 }
 0x286   : > { %2041 = vmatprep.subr.bf16.mxu0 %v3190_v7 }
 0x289   : > { %2042 = vmatpush1.bf16.msra.mxu0 %v3188_v8 }
 0x28a   : > { %2043 = vmatprep.subr.bf16.mxu0 %v3193_v9 }
 0x28d   : > { %2044 = vmatpush1.bf16.msra.mxu0 %v3191_v10 }
 0x28e   : > { %2045 = vmatprep.subr.bf16.mxu0 %v3196_v11 }
 0x291   : > { %2046 = vmatpush1.bf16.msra.mxu0 %v3194_v12 }
 0x292   : > { %2047 = vmatprep.subr.bf16.mxu0 %v3199_v13 }
 0x295   : > { %2048 = vmatpush1.bf16.msra.mxu0 %v3197_v14 }
 0x303   : > { %v1325_v18 = vpop.f32.mrb[32].mxu0 }
 0x304   : > { %v1326_v19 = vadd.f32 %v1325_v18, %v3930_v16  ;;  %v1327_v20 = vpop.f32.mrb[33].mxu0 }
 0x305   : > { %v1328_v30 = vadd.f32 %v1327_v20, %v3933_v17  ;;  %v1329_v31 = vpop.f32.mrb[34].mxu0 }
 0x306   : > { %v1330_v21 = vadd.f32 %v1329_v31, %v3930_v16  ;;  %v1331_v22 = vpop.f32.mrb[35].mxu0  ;;  %v1404_v24 = vmax.f32 %v1326_v19, 0.0 }
 0x307   : > { %v1332_v23 = vadd.f32 %v1331_v22, %v3933_v17  ;;  %v1405_v26 = vmax.f32 %v1328_v30, 0.0 }
 0x308   : > { %v1406_v25 = vmax.f32 %v1330_v21, 0.0 }
 0x309   : > { %v1407_v28 = vmax.f32 %v1332_v23, 0.0 }
 0x30a   : > { %v1436_v32 = vpack.c.bf16 %v1406_v25, %v1404_v24 }
 0x30b   : > { %v1437_v33 = vpack.c.bf16 %v1407_v28, %v1405_v26  ;;  %v1335_v34 = vpop.f32.mrb[36].mxu0 }
 0x30c   : > { %v1336_v35 = vadd.f32 %v1335_v34, %v3930_v16  ;;  %v1337_v36 = vpop.f32.mrb[37].mxu0 }
 0x30d   : > { %v1338_v37 = vadd.f32 %v1337_v36, %v3933_v17  ;;  %v1339_v38 = vpop.f32.mrb[38].mxu0  ;;  %1688 = vmatprep.mubr.bf16.mxu1 %v1437_v33 }
 0x30e   : > { %v1340_v39 = vadd.f32 %v1339_v38, %v3930_v16  ;;  %v1341_v40 = vpop.f32.mrb[39].mxu0  ;;  %1689 = vmatmul.mubr.bf16.vlgmr.msra.gmra.mrb[32].mxu1 %v1436_v32  ;;  %v1408_v42 = vmax.f32 %v1336_v35, 0.0 }
 0x30f   : > { %v1342_v41 = vadd.f32 %v1341_v40, %v3933_v17  ;;  %v1409_v44 = vmax.f32 %v1338_v37, 0.0 }
 0x310   : > { %v1410_v43 = vmax.f32 %v1340_v39, 0.0 }
 0x311   : > { %v1411_v45 = vmax.f32 %v1342_v41, 0.0 }
 0x312   : > { %v1438_v46 = vpack.c.bf16 %v1410_v43, %v1408_v42 }
 0x313   : > { %v1439_v47 = vpack.c.bf16 %v1411_v45, %v1409_v44  ;;  %v1345_v48 = vpop.f32.mrb[40].mxu0 }
 0x314   : > { %v1346_v49 = vadd.f32 %v1345_v48, %v3930_v16  ;;  %v1347_v50 = vpop.f32.mrb[41].mxu0 }
 0x315   : > { %v1348_v55 = vadd.f32 %v1347_v50, %v3933_v17  ;;  %v1349_v51 = vpop.f32.mrb[42].mxu0  ;;  %1698 = vmatprep.mubr.bf16.mxu1 %v1439_v47 }
 0x316   : > { %v1350_v52 = vadd.f32 %v1349_v51, %v3930_v16  ;;  %v1351_v56 = vpop.f32.mrb[43].mxu0  ;;  %1699 = vmatmul.mubr.bf16.gmra.mrb[36].mxu1 %v1438_v46  ;;  %v1412_v54 = vmax.f32 %v1346_v49, 0.0 }
 0x317   : > { %v1352_v53 = vadd.f32 %v1351_v56, %v3933_v17  ;;  %v1413_v58 = vmax.f32 %v1348_v55, 0.0 }
 0x318   : > { %v1414_v57 = vmax.f32 %v1350_v52, 0.0 }
 0x319   : > { %v1415_v59 = vmax.f32 %v1352_v53, 0.0 }
 0x31a   : > { %v1440_v60 = vpack.c.bf16 %v1414_v57, %v1412_v54 }
 0x31b   : > { %v1441_v61 = vpack.c.bf16 %v1415_v59, %v1413_v58  ;;  %v1355_v62 = vpop.f32.mrb[44].mxu0 }
 0x31c   : > { %v1356_v63 = vadd.f32 %v1355_v62, %v3930_v16  ;;  %v1357_v0 = vpop.f32.mrb[45].mxu0 }
 0x31d   : > { %v1358_v1 = vadd.f32 %v1357_v0, %v3933_v17  ;;  %v1359_v2 = vpop.f32.mrb[46].mxu0  ;;  %1708 = vmatprep.mubr.bf16.mxu1 %v1441_v61 }
 0x31e   : > { %v1360_v3 = vadd.f32 %v1359_v2, %v3930_v16  ;;  %v1361_v4 = vpop.f32.mrb[47].mxu0  ;;  %1709 = vmatmul.mubr.bf16.gmra.mrb[40].mxu1 %v1440_v60  ;;  %v1416_v6 = vmax.f32 %v1356_v63, 0.0 }
 0x31f   : > { %v1362_v5 = vadd.f32 %v1361_v4, %v3933_v17  ;;  %v1417_v8 = vmax.f32 %v1358_v1, 0.0 }
 0x320   : > { %v1418_v7 = vmax.f32 %v1360_v3, 0.0 }
 0x321   : > { %v1419_v9 = vmax.f32 %v1362_v5, 0.0 }
 0x322   : > { %v1442_v10 = vpack.c.bf16 %v1418_v7, %v1416_v6 }
 0x323   : > { %v1443_v11 = vpack.c.bf16 %v1419_v9, %v1417_v8  ;;  %v1365_v12 = vpop.f32.mrb[48].mxu0  ;;  %v3202_v8 = vld [vmem:[#allocation5 + $0xe4] ss:$8 sps:$4 sm:$0xff]   ;;  %v3200_v9 = vld [vmem:[#allocation5 + $0xe0] ss:$8 sps:$4 sm:$0xff]  }
 0x324   : > { %v1366_v13 = vadd.f32 %v1365_v12, %v3930_v16  ;;  %v1367_v14 = vpop.f32.mrb[49].mxu0  ;;  %2049 = vmatprep.subr.bf16.mxu0 %v3202_v8  ;;  %v3207_v12 = vld [vmem:[#allocation7] sm:$0xff]  }
 0x325   : > { %v1368_v15 = vadd.f32 %v1367_v14, %v3933_v17  ;;  %v1369_v18 = vpop.f32.mrb[50].mxu0  ;;  %1718 = vmatprep.mubr.bf16.mxu1 %v1443_v11  ;;  %2050 = vmatpush1.bf16.msra.mxu0 %v3200_v9  ;;  %v3203_v11 = vld [vmem:[#allocation5 + $0xf0] ss:$8 sps:$4 sm:$0xff]  }
 0x326   : > { %v1370_v19 = vadd.f32 %v1369_v18, %v3930_v16  ;;  %v1371_v20 = vpop.f32.mrb[51].mxu0  ;;  %1719 = vmatmul.mubr.bf16.gmra.mrb[44].mxu1 %v1442_v10  ;;  %v1420_v31 = vmax.f32 %v1366_v13, 0.0  ;;  %v3205_v10 = vld [vmem:[#allocation5 + $0xf4] ss:$8 sps:$4 sm:$0xff]   ;;  %v3209_v13 = vld [vmem:[#allocation7 + $0x8] sm:$0xff]  }
 0x327   : > { %v1372_v30 = vadd.f32 %v1371_v20, %v3933_v17  ;;  %v1421_v22 = vmax.f32 %v1368_v15, 0.0  ;;  %2051 = vmatprep.subr.bf16.mxu0 %v3205_v10  ;;  %v3210_v14 = vld [vmem:[#allocation7 + $0x50] sm:$0xff]   ;;  %v3212_v18 = vld [vmem:[#allocation7 + $0x58] sm:$0xff]   ;;  %v3969_v20 = vld [vmem:[#allocation7 + $0x60] sm:$0xff]  }
 0x328   : > { %v1422_v21 = vmax.f32 %v1370_v19, 0.0  ;;  %v3211_v15 = vld [vmem:[#allocation7 + $0x10] sm:$0xff]   ;;  %v3967_v19 = vld [vmem:[#allocation7 + $0x18] sm:$0xff]  }
 0x329   : > { %v1423_v23 = vmax.f32 %v1372_v30, 0.0  ;;  %2052 = vmatpush1.bf16.msra.mxu0 %v3203_v11  ;;  %v3973_v30 = vld [vmem:[#allocation7 + $0x20] sm:$0xff]  }
 0x32a   : > { %v1444_v24 = vpack.c.bf16 %v1422_v21, %v1420_v31  ;;  %v3975_v31 = vld [vmem:[#allocation7 + $0x68] sm:$0xff]   ;;  %v1484_v21 = vld [vmem:[%s4159_s8] sm:$0x3] }
 0x32b   : > { %v1445_v25 = vpack.c.bf16 %v1423_v23, %v1421_v22  ;;  %v1375_v26 = vpop.f32.mrb[52].mxu0  ;;  %v3983_v22 = vrot.slane %v1484_v21, %v3828_v27  ;;  %v3986_v23 = vrot.slane %v1484_v21, %v3833_v29 }
 0x32c   : > { %v1376_v28 = vadd.f32 %v1375_v26, %v3930_v16  ;;  %v1377_v32 = vpop.f32.mrb[53].mxu0 }
 0x32d   : > { %v1378_v33 = vadd.f32 %v1377_v32, %v3933_v17  ;;  %v1379_v34 = vpop.f32.mrb[54].mxu0  ;;  %1728 = vmatprep.mubr.bf16.mxu1 %v1445_v25 }
 0x32e   : > { %v1380_v35 = vadd.f32 %v1379_v34, %v3930_v16  ;;  %v1381_v36 = vpop.f32.mrb[55].mxu0  ;;  %1729 = vmatmul.mubr.bf16.gmra.mrb[48].mxu1 %v1444_v24  ;;  %v1424_v38 = vmax.f32 %v1376_v28, 0.0 }
 0x32f   : > { %v1382_v37 = vadd.f32 %v1381_v36, %v3933_v17  ;;  %v1425_v40 = vmax.f32 %v1378_v33, 0.0 }
 0x330   : > { %v1426_v39 = vmax.f32 %v1380_v35, 0.0 }
 0x331   : > { %v1427_v41 = vmax.f32 %v1382_v37, 0.0 }
 0x332   : > { %v1446_v42 = vpack.c.bf16 %v1426_v39, %v1424_v38 }
 0x333   : > { %v1447_v43 = vpack.c.bf16 %v1427_v41, %v1425_v40  ;;  %v1385_v44 = vpop.f32.mrb[56].mxu0 }
 0x334   : > { %v1386_v45 = vadd.f32 %v1385_v44, %v3930_v16  ;;  %v1387_v46 = vpop.f32.mrb[57].mxu0 }
 0x335   : > { %v1388_v47 = vadd.f32 %v1387_v46, %v3933_v17  ;;  %v1389_v48 = vpop.f32.mrb[58].mxu0  ;;  %1738 = vmatprep.mubr.bf16.mxu1 %v1447_v43 }
 0x336   : > { %v1390_v49 = vadd.f32 %v1389_v48, %v3930_v16  ;;  %v1391_v50 = vpop.f32.mrb[59].mxu0  ;;  %1739 = vmatmul.mubr.bf16.gmra.mrb[52].mxu1 %v1446_v42  ;;  %v1428_v51 = vmax.f32 %v1386_v45, 0.0 }
 0x337   : > { %v1392_v55 = vadd.f32 %v1391_v50, %v3933_v17  ;;  %v1429_v56 = vmax.f32 %v1388_v47, 0.0 }
 0x338   : > { %v1430_v52 = vmax.f32 %v1390_v49, 0.0 }
 0x339   : > { %v1431_v53 = vmax.f32 %v1392_v55, 0.0 }
 0x33a   : > { %v1448_v54 = vpack.c.bf16 %v1430_v52, %v1428_v51 }
 0x33b   : > { %v1449_v57 = vpack.c.bf16 %v1431_v53, %v1429_v56  ;;  %v1395_v58 = vpop.f32.mrb[60].mxu0 }
 0x33c   : > { %v1396_v59 = vadd.f32 %v1395_v58, %v3930_v16  ;;  %v1397_v60 = vpop.f32.mrb[61].mxu0 }
 0x33d   : > { %v1398_v61 = vadd.f32 %v1397_v60, %v3933_v17  ;;  %v1399_v62 = vpop.f32.mrb[62].mxu0  ;;  %1748 = vmatprep.mubr.bf16.mxu1 %v1449_v57 }
 0x33e   : > { %v1400_v63 = vadd.f32 %v1399_v62, %v3930_v16  ;;  %v1401_v0 = vpop.f32.mrb[63].mxu0  ;;  %1749 = vmatmul.mubr.bf16.gmra.mrb[56].mxu1 %v1448_v54  ;;  %v1432_v2 = vmax.f32 %v1396_v59, 0.0  ;;  %v3206_v16 = vld [vmem:[#allocation7 + $0x40] sm:$0xff]  }
 0x33f   : > { %v1402_v1 = vadd.f32 %v1401_v0, %v3933_v17  ;;  %v1433_v4 = vmax.f32 %v1398_v61, 0.0  ;;  %2919 = vmatprep.subr.bf16.mxu1 %v3206_v16  ;;  %v3208_v17 = vld [vmem:[#allocation7 + $0x48] sm:$0xff]   ;;  %2855 = vmatprep.subr.bf16.mxu0 %v3206_v16 }
 0x340   : > { %v1434_v3 = vmax.f32 %v1400_v63, 0.0  ;;  %2927 = vmatpush3.bf16.msra.mxu1 %v3207_v12 }
 0x341   : > { %v1435_v5 = vmax.f32 %v1402_v1, 0.0  ;;  %2920 = vmatprep.subr.bf16.mxu1 %v3208_v17 }
 0x342   : > { %v1450_v6 = vpack.c.bf16 %v1434_v3, %v1432_v2 }
 0x343   : > { %v1451_v7 = vpack.c.bf16 %v1435_v5, %v1433_v4 }
 0x344   : > { %2928 = vmatpush3.bf16.msra.mxu1 %v3209_v13 }
 0x345   : > { %1758 = vmatprep.mubr.bf16.mxu1 %v1451_v7  ;;  %2921 = vmatprep.subr.bf16.mxu1 %v3210_v14 }
 0x346   : > { %1759 = vmatmul.mubr.bf16.gmra.mrb[60].mxu1 %v1450_v6 }
 0x348   : > { %2929 = vmatpush3.bf16.msra.mxu1 %v3211_v15 }
 0x349   : > { %2922 = vmatprep.subr.bf16.mxu1 %v3212_v18 }
 0x34c   : > { %2930 = vmatpush3.bf16.msra.mxu1 %v3967_v19 }
 0x34d   : > { %2923 = vmatprep.subr.bf16.mxu1 %v3969_v20 }
 0x350   : > { %2931 = vmatpush3.bf16.msra.mxu1 %v3973_v30 }
 0x351   : > { %2924 = vmatprep.subr.bf16.mxu1 %v3975_v31 }
 0x3e1   : > { %v1690_v24 = vpop.f32.mrb[32].mxu1 }
 0x3e2   : > { %v1691_v25 = vadd.f32 %v1690_v24, %v3983_v22  ;;  %v1692_v26 = vpop.f32.mrb[33].mxu1 }
 0x3e3   : > { %v1693_v28 = vadd.f32 %v1692_v26, %v3986_v23  ;;  %v1694_v32 = vpop.f32.mrb[34].mxu1 }
 0x3e4   : > { %v1695_v33 = vadd.f32 %v1694_v32, %v3983_v22  ;;  %v1696_v34 = vpop.f32.mrb[35].mxu1  ;;  %v1769_v36 = vmax.f32 %v1691_v25, 0.0 }
 0x3e5   : > { %v1697_v35 = vadd.f32 %v1696_v34, %v3986_v23  ;;  %v1770_v38 = vmax.f32 %v1693_v28, 0.0 }
 0x3e6   : > { %v1771_v37 = vmax.f32 %v1695_v33, 0.0 }
 0x3e7   : > { %v1772_v39 = vmax.f32 %v1697_v35, 0.0 }
 0x3e8   : > { %v1801_v40 = vpack.c.bf16 %v1771_v37, %v1769_v36 }
 0x3e9   : > { %v1802_v41 = vpack.c.bf16 %v1772_v39, %v1770_v38  ;;  %v1700_v42 = vpop.f32.mrb[36].mxu1 }
 0x3ea   : > { %v1701_v43 = vadd.f32 %v1700_v42, %v3983_v22  ;;  %v1702_v44 = vpop.f32.mrb[37].mxu1 }
 0x3eb   : > { %v1703_v45 = vadd.f32 %v1702_v44, %v3986_v23  ;;  %v1704_v46 = vpop.f32.mrb[38].mxu1  ;;  %2053 = vmatprep.mubr.bf16.mxu0 %v1802_v41 }
 0x3ec   : > { %v1705_v47 = vadd.f32 %v1704_v46, %v3983_v22  ;;  %v1706_v48 = vpop.f32.mrb[39].mxu1  ;;  %2054 = vmatmul.mubr.bf16.vlgmr.msra.gmra.mrb[64].mxu0 %v1801_v40  ;;  %v1773_v50 = vmax.f32 %v1701_v43, 0.0 }
 0x3ed   : > { %v1707_v49 = vadd.f32 %v1706_v48, %v3986_v23  ;;  %2856 = vmatpush3.bf16.msra.mxu0 %v3207_v12  ;;  %v1774_v51 = vmax.f32 %v1703_v45, 0.0 }
 0x3ee   : > { %v1775_v55 = vmax.f32 %v1705_v47, 0.0  ;;  %2857 = vmatprep.subr.bf16.mxu0 %v3208_v17 }
 0x3ef   : > { %v1776_v52 = vmax.f32 %v1707_v49, 0.0 }
 0x3f0   : > { %v1803_v56 = vpack.c.bf16 %v1775_v55, %v1773_v50 }
 0x3f1   : > { %v1804_v53 = vpack.c.bf16 %v1776_v52, %v1774_v51  ;;  %v1710_v54 = vpop.f32.mrb[40].mxu1  ;;  %2858 = vmatpush3.bf16.msra.mxu0 %v3209_v13 }
 0x3f2   : > { %v1711_v57 = vadd.f32 %v1710_v54, %v3983_v22  ;;  %v1712_v58 = vpop.f32.mrb[41].mxu1  ;;  %2859 = vmatprep.subr.bf16.mxu0 %v3210_v14 }
 0x3f3   : > { %v1713_v59 = vadd.f32 %v1712_v58, %v3986_v23  ;;  %v1714_v60 = vpop.f32.mrb[42].mxu1  ;;  %2063 = vmatprep.mubr.bf16.mxu0 %v1804_v53 }
 0x3f4   : > { %v1715_v61 = vadd.f32 %v1714_v60, %v3983_v22  ;;  %v1716_v62 = vpop.f32.mrb[43].mxu1  ;;  %2064 = vmatmul.mubr.bf16.gmra.mrb[68].mxu0 %v1803_v56  ;;  %v1777_v0 = vmax.f32 %v1711_v57, 0.0 }
 0x3f5   : > { %v1717_v63 = vadd.f32 %v1716_v62, %v3986_v23  ;;  %2860 = vmatpush3.bf16.msra.mxu0 %v3211_v15  ;;  %v1778_v2 = vmax.f32 %v1713_v59, 0.0 }
 0x3f6   : > { %v1779_v1 = vmax.f32 %v1715_v61, 0.0  ;;  %2861 = vmatprep.subr.bf16.mxu0 %v3212_v18 }
 0x3f7   : > { %v1780_v3 = vmax.f32 %v1717_v63, 0.0 }
 0x3f8   : > { %v1805_v4 = vpack.c.bf16 %v1779_v1, %v1777_v0 }
 0x3f9   : > { %v1806_v5 = vpack.c.bf16 %v1780_v3, %v1778_v2  ;;  %v1720_v6 = vpop.f32.mrb[44].mxu1  ;;  %2862 = vmatpush3.bf16.msra.mxu0 %v3967_v19 }
 0x3fa   : > { %v1721_v7 = vadd.f32 %v1720_v6, %v3983_v22  ;;  %v1722_v8 = vpop.f32.mrb[45].mxu1  ;;  %2863 = vmatprep.subr.bf16.mxu0 %v3969_v20 }
 0x3fb   : > { %v1723_v9 = vadd.f32 %v1722_v8, %v3986_v23  ;;  %v1724_v10 = vpop.f32.mrb[46].mxu1  ;;  %2073 = vmatprep.mubr.bf16.mxu0 %v1806_v5 }
 0x3fc   : > { %v1725_v11 = vadd.f32 %v1724_v10, %v3983_v22  ;;  %v1726_v16 = vpop.f32.mrb[47].mxu1  ;;  %2074 = vmatmul.mubr.bf16.gmra.mrb[72].mxu0 %v1805_v4  ;;  %v1781_v17 = vmax.f32 %v1721_v7, 0.0 }
 0x3fd   : > { %v1727_v12 = vadd.f32 %v1726_v16, %v3986_v23  ;;  %2864 = vmatpush3.bf16.msra.mxu0 %v3973_v30  ;;  %v1782_v14 = vmax.f32 %v1723_v9, 0.0 }
 0x3fe   : > { %v1783_v13 = vmax.f32 %v1725_v11, 0.0  ;;  %2865 = vmatprep.subr.bf16.mxu0 %v3975_v31 }
 0x3ff   : > { %v1784_v15 = vmax.f32 %v1727_v12, 0.0 }
 0x400   : > { %v1807_v18 = vpack.c.bf16 %v1783_v13, %v1781_v17 }
 0x401   : > { %v1808_v19 = vpack.c.bf16 %v1784_v15, %v1782_v14  ;;  %v1730_v20 = vpop.f32.mrb[48].mxu1  ;;  %v3217_v14 = vld [vmem:[#allocation7 + $0x28] sm:$0xff]   ;;  %v3218_v15 = vld [vmem:[#allocation7 + $0x70] sm:$0xff]  }
 0x402   : > { %v1731_v21 = vadd.f32 %v1730_v20, %v3983_v22  ;;  %v1732_v24 = vpop.f32.mrb[49].mxu1  ;;  %2866 = vmatpush3.bf16.msra.mxu0 %v3217_v14  ;;  %2932 = vmatpush3.bf16.msra.mxu1 %v3217_v14 }
 0x403   : > { %v1733_v25 = vadd.f32 %v1732_v24, %v3986_v23  ;;  %v1734_v26 = vpop.f32.mrb[50].mxu1  ;;  %2083 = vmatprep.mubr.bf16.mxu0 %v1808_v19  ;;  %2867 = vmatprep.subr.bf16.mxu0 %v3218_v15  ;;  %v3221_v19 = vld [vmem:[#allocation7 + $0x38] sm:$0xff]  }
 0x404   : > { %v1735_v28 = vadd.f32 %v1734_v26, %v3983_v22  ;;  %v1736_v32 = vpop.f32.mrb[51].mxu1  ;;  %2084 = vmatmul.mubr.bf16.gmra.mrb[76].mxu0 %v1807_v18  ;;  %v1785_v33 = vmax.f32 %v1731_v21, 0.0  ;;  %v3219_v18 = vld [vmem:[#allocation7 + $0x30] sm:$0xff]   ;;  %2925 = vmatprep.subr.bf16.mxu1 %v3218_v15 }
 0x405   : > { %v1737_v30 = vadd.f32 %v1736_v32, %v3986_v23  ;;  %v1786_v34 = vmax.f32 %v1733_v25, 0.0 }
 0x406   : > { %v1787_v31 = vmax.f32 %v1735_v28, 0.0  ;;  %2868 = vmatpush3.bf16.msra.mxu0 %v3219_v18  ;;  %2933 = vmatpush3.bf16.msra.mxu1 %v3219_v18 }
 0x407   : > { %v1788_v35 = vmax.f32 %v1737_v30, 0.0 }
 0x408   : > { %v1809_v36 = vpack.c.bf16 %v1787_v31, %v1785_v33 }
 0x409   : > { %v1810_v37 = vpack.c.bf16 %v1788_v35, %v1786_v34  ;;  %v1740_v38 = vpop.f32.mrb[52].mxu1 }
 0x40a   : > { %v1741_v39 = vadd.f32 %v1740_v38, %v3983_v22  ;;  %v1742_v40 = vpop.f32.mrb[53].mxu1 }
 0x40b   : > { %v1743_v41 = vadd.f32 %v1742_v40, %v3986_v23  ;;  %v1744_v42 = vpop.f32.mrb[54].mxu1  ;;  %2093 = vmatprep.mubr.bf16.mxu0 %v1810_v37 }
 0x40c   : > { %v1745_v43 = vadd.f32 %v1744_v42, %v3983_v22  ;;  %v1746_v44 = vpop.f32.mrb[55].mxu1  ;;  %2094 = vmatmul.mubr.bf16.gmra.mrb[80].mxu0 %v1809_v36  ;;  %v1789_v46 = vmax.f32 %v1741_v39, 0.0 }
 0x40d   : > { %v1747_v45 = vadd.f32 %v1746_v44, %v3986_v23  ;;  %v1790_v48 = vmax.f32 %v1743_v41, 0.0 }
 0x40e   : > { %v1791_v47 = vmax.f32 %v1745_v43, 0.0 }
 0x40f   : > { %v1792_v49 = vmax.f32 %v1747_v45, 0.0 }
 0x410   : > { %v1811_v50 = vpack.c.bf16 %v1791_v47, %v1789_v46 }
 0x411   : > { %v1812_v55 = vpack.c.bf16 %v1792_v49, %v1790_v48  ;;  %v1750_v51 = vpop.f32.mrb[56].mxu1 }
 0x412   : > { %v1751_v52 = vadd.f32 %v1750_v51, %v3983_v22  ;;  %v1752_v56 = vpop.f32.mrb[57].mxu1 }
 0x413   : > { %v1753_v53 = vadd.f32 %v1752_v56, %v3986_v23  ;;  %v1754_v54 = vpop.f32.mrb[58].mxu1  ;;  %2103 = vmatprep.mubr.bf16.mxu0 %v1812_v55 }
 0x414   : > { %v1755_v57 = vadd.f32 %v1754_v54, %v3983_v22  ;;  %v1756_v58 = vpop.f32.mrb[59].mxu1  ;;  %2104 = vmatmul.mubr.bf16.gmra.mrb[84].mxu0 %v1811_v50  ;;  %v1793_v60 = vmax.f32 %v1751_v52, 0.0 }
 0x415   : > { %v1757_v59 = vadd.f32 %v1756_v58, %v3986_v23  ;;  %v1794_v62 = vmax.f32 %v1753_v53, 0.0 }
 0x416   : > { %v1795_v61 = vmax.f32 %v1755_v57, 0.0 }
 0x417   : > { %v1796_v63 = vmax.f32 %v1757_v59, 0.0 }
 0x418   : > { %v1813_v0 = vpack.c.bf16 %v1795_v61, %v1793_v60 }
 0x419   : > { %v1814_v1 = vpack.c.bf16 %v1796_v63, %v1794_v62  ;;  %v1760_v2 = vpop.f32.mrb[60].mxu1 }
 0x41a   : > { %v1761_v3 = vadd.f32 %v1760_v2, %v3983_v22  ;;  %v1762_v4 = vpop.f32.mrb[61].mxu1 }
 0x41b   : > { %v1763_v5 = vadd.f32 %v1762_v4, %v3986_v23  ;;  %v1764_v6 = vpop.f32.mrb[62].mxu1  ;;  %2113 = vmatprep.mubr.bf16.mxu0 %v1814_v1 }
 0x41c   : > { %v1765_v7 = vadd.f32 %v1764_v6, %v3983_v22  ;;  %v1766_v8 = vpop.f32.mrb[63].mxu1  ;;  %2114 = vmatmul.mubr.bf16.gmra.mrb[88].mxu0 %v1813_v0  ;;  %v1797_v10 = vmax.f32 %v1761_v3, 0.0  ;;  %v3220_v22 = vld [vmem:[#allocation7 + $0x78] sm:$0xff]  }
 0x41d   : > { %v1767_v9 = vadd.f32 %v1766_v8, %v3986_v23  ;;  %v1798_v16 = vmax.f32 %v1763_v5, 0.0  ;;  %2869 = vmatprep.subr.bf16.mxu0 %v3220_v22  ;;  %2926 = vmatprep.subr.bf16.mxu1 %v3220_v22  ;;  %v1849_v23 = vld [vmem:[%s4161_s10] sm:$0x3] }
 0x41e   : > { %v1799_v11 = vmax.f32 %v1765_v7, 0.0  ;;  %2870 = vmatpush3.bf16.msra.mxu0 %v3221_v19  ;;  %2934 = vmatpush3.bf16.msra.mxu1 %v3221_v19  ;;  %v4028_v20 = vrot.slane %v1849_v23, %v3828_v27  ;;  %v4031_v21 = vrot.slane %v1849_v23, %v3833_v29 }
 0x41f   : > { %v1800_v12 = vmax.f32 %v1767_v9, 0.0 }
 0x420   : > { %v1815_v17 = vpack.c.bf16 %v1799_v11, %v1797_v10 }
 0x421   : > { %v1816_v13 = vpack.c.bf16 %v1800_v12, %v1798_v16 }
 0x423   : > { %2123 = vmatprep.mubr.bf16.mxu0 %v1816_v13 }
 0x424   : > { %2124 = vmatmul.mubr.bf16.gmra.mrb[92].mxu0 %v1815_v17 }
 0x4bf   : > { %v2055_v24 = vpop.f32.mrb[64].mxu0 }
 0x4c0   : > { %v2056_v25 = vadd.f32 %v2055_v24, %v4028_v20  ;;  %v2057_v26 = vpop.f32.mrb[65].mxu0 }
 0x4c1   : > { %v2058_v28 = vadd.f32 %v2057_v26, %v4031_v21  ;;  %v2059_v32 = vpop.f32.mrb[66].mxu0 }
 0x4c2   : > { %v2060_v30 = vadd.f32 %v2059_v32, %v4028_v20  ;;  %v2061_v33 = vpop.f32.mrb[67].mxu0  ;;  %v2134_v34 = vmax.f32 %v2056_v25, 0.0 }
 0x4c3   : > { %v2062_v31 = vadd.f32 %v2061_v33, %v4031_v21  ;;  %v2135_v36 = vmax.f32 %v2058_v28, 0.0 }
 0x4c4   : > { %v2136_v35 = vmax.f32 %v2060_v30, 0.0 }
 0x4c5   : > { %v2137_v27 = vmax.f32 %v2062_v31, 0.0 }
 0x4c6   : > { %v2166_v37 = vpack.c.bf16 %v2136_v35, %v2134_v34 }
 0x4c7   : > { %v2167_v38 = vpack.c.bf16 %v2137_v27, %v2135_v36  ;;  %v2065_v29 = vpop.f32.mrb[68].mxu0 }
 0x4c8   : > { %v2066_v39 = vadd.f32 %v2065_v29, %v4028_v20  ;;  %v2067_v40 = vpop.f32.mrb[69].mxu0 }
 0x4c9   : > { %v2068_v41 = vadd.f32 %v2067_v40, %v4031_v21  ;;  %v2069_v42 = vpop.f32.mrb[70].mxu0  ;;  %2349 = vmatprep.mubr.bf16.mxu0 %v2167_v38 }
 0x4ca   : > { %v2070_v43 = vadd.f32 %v2069_v42, %v4028_v20  ;;  %v2071_v44 = vpop.f32.mrb[71].mxu0  ;;  %2350 = vmatmul.mubr.bf16.vlgmr.msra.gmra.mrb[96].mxu0 %v2166_v37  ;;  %v2138_v46 = vmax.f32 %v2066_v39, 0.0 }
 0x4cb   : > { %v2072_v45 = vadd.f32 %v2071_v44, %v4031_v21  ;;  %v2139_v48 = vmax.f32 %v2068_v41, 0.0 }
 0x4cc   : > { %v2140_v47 = vmax.f32 %v2070_v43, 0.0 }
 0x4cd   : > { %v2141_v49 = vmax.f32 %v2072_v45, 0.0 }
 0x4ce   : > { %v2168_v50 = vpack.c.bf16 %v2140_v47, %v2138_v46 }
 0x4cf   : > { %v2169_v55 = vpack.c.bf16 %v2141_v49, %v2139_v48  ;;  %v2075_v51 = vpop.f32.mrb[72].mxu0 }
 0x4d0   : > { %v2076_v52 = vadd.f32 %v2075_v51, %v4028_v20  ;;  %v2077_v56 = vpop.f32.mrb[73].mxu0 }
 0x4d1   : > { %v2078_v53 = vadd.f32 %v2077_v56, %v4031_v21  ;;  %v2079_v54 = vpop.f32.mrb[74].mxu0  ;;  %2357 = vmatprep.mubr.bf16.mxu0 %v2169_v55 }
 0x4d2   : > { %v2080_v57 = vadd.f32 %v2079_v54, %v4028_v20  ;;  %v2081_v58 = vpop.f32.mrb[75].mxu0  ;;  %2358 = vmatmul.mubr.bf16.gmra.mrb[100].mxu0 %v2168_v50  ;;  %v2142_v60 = vmax.f32 %v2076_v52, 0.0 }
 0x4d3   : > { %v2082_v59 = vadd.f32 %v2081_v58, %v4031_v21  ;;  %v2143_v62 = vmax.f32 %v2078_v53, 0.0 }
 0x4d4   : > { %v2144_v61 = vmax.f32 %v2080_v57, 0.0 }
 0x4d5   : > { %v2145_v63 = vmax.f32 %v2082_v59, 0.0 }
 0x4d6   : > { %v2170_v0 = vpack.c.bf16 %v2144_v61, %v2142_v60 }
 0x4d7   : > { %v2171_v1 = vpack.c.bf16 %v2145_v63, %v2143_v62  ;;  %v2085_v2 = vpop.f32.mrb[76].mxu0 }
 0x4d8   : > { %v2086_v3 = vadd.f32 %v2085_v2, %v4028_v20  ;;  %v2087_v4 = vpop.f32.mrb[77].mxu0 }
 0x4d9   : > { %v2088_v5 = vadd.f32 %v2087_v4, %v4031_v21  ;;  %v2089_v6 = vpop.f32.mrb[78].mxu0  ;;  %2365 = vmatprep.mubr.bf16.mxu0 %v2171_v1 }
 0x4da   : > { %v2090_v7 = vadd.f32 %v2089_v6, %v4028_v20  ;;  %v2091_v8 = vpop.f32.mrb[79].mxu0  ;;  %2366 = vmatmul.mubr.bf16.gmra.mrb[104].mxu0 %v2170_v0  ;;  %v2146_v10 = vmax.f32 %v2086_v3, 0.0 }
 0x4db   : > { %v2092_v9 = vadd.f32 %v2091_v8, %v4031_v21  ;;  %v2147_v16 = vmax.f32 %v2088_v5, 0.0 }
 0x4dc   : > { %v2148_v11 = vmax.f32 %v2090_v7, 0.0 }
 0x4dd   : > { %v2149_v12 = vmax.f32 %v2092_v9, 0.0 }
 0x4de   : > { %v2172_v17 = vpack.c.bf16 %v2148_v11, %v2146_v10 }
 0x4df   : > { %v2173_v13 = vpack.c.bf16 %v2149_v12, %v2147_v16  ;;  %v2095_v14 = vpop.f32.mrb[80].mxu0 }
 0x4e0   : > { %v2096_v15 = vadd.f32 %v2095_v14, %v4028_v20  ;;  %v2097_v18 = vpop.f32.mrb[81].mxu0 }
 0x4e1   : > { %v2098_v22 = vadd.f32 %v2097_v18, %v4031_v21  ;;  %v2099_v19 = vpop.f32.mrb[82].mxu0  ;;  %2373 = vmatprep.mubr.bf16.mxu1 %v2173_v13 }
 0x4e2   : > { %v2100_v23 = vadd.f32 %v2099_v19, %v4028_v20  ;;  %v2101_v24 = vpop.f32.mrb[83].mxu0  ;;  %2374 = vmatmul.mubr.bf16.vlgmr.msra.gmra.mrb[64].mxu1 %v2172_v17  ;;  %v2150_v26 = vmax.f32 %v2096_v15, 0.0 }
 0x4e3   : > { %v2102_v25 = vadd.f32 %v2101_v24, %v4031_v21  ;;  %v2151_v32 = vmax.f32 %v2098_v22, 0.0 }
 0x4e4   : > { %v2152_v28 = vmax.f32 %v2100_v23, 0.0 }
 0x4e5   : > { %v2153_v30 = vmax.f32 %v2102_v25, 0.0 }
 0x4e6   : > { %v2174_v33 = vpack.c.bf16 %v2152_v28, %v2150_v26 }
 0x4e7   : > { %v2175_v31 = vpack.c.bf16 %v2153_v30, %v2151_v32  ;;  %v2105_v34 = vpop.f32.mrb[84].mxu0 }
 0x4e8   : > { %v2106_v35 = vadd.f32 %v2105_v34, %v4028_v20  ;;  %v2107_v36 = vpop.f32.mrb[85].mxu0 }
 0x4e9   : > { %v2108_v27 = vadd.f32 %v2107_v36, %v4031_v21  ;;  %v2109_v37 = vpop.f32.mrb[86].mxu0  ;;  %2381 = vmatprep.mubr.bf16.mxu1 %v2175_v31 }
 0x4ea   : > { %v2110_v38 = vadd.f32 %v2109_v37, %v4028_v20  ;;  %v2111_v29 = vpop.f32.mrb[87].mxu0  ;;  %2382 = vmatmul.mubr.bf16.gmra.mrb[68].mxu1 %v2174_v33  ;;  %v2154_v40 = vmax.f32 %v2106_v35, 0.0 }
 0x4eb   : > { %v2112_v39 = vadd.f32 %v2111_v29, %v4031_v21  ;;  %v2155_v42 = vmax.f32 %v2108_v27, 0.0 }
 0x4ec   : > { %v2156_v41 = vmax.f32 %v2110_v38, 0.0 }
 0x4ed   : > { %v2157_v43 = vmax.f32 %v2112_v39, 0.0 }
 0x4ee   : > { %v2176_v44 = vpack.c.bf16 %v2156_v41, %v2154_v40 }
 0x4ef   : > { %v2177_v45 = vpack.c.bf16 %v2157_v43, %v2155_v42  ;;  %v2115_v46 = vpop.f32.mrb[88].mxu0 }
 0x4f0   : > { %v2116_v47 = vadd.f32 %v2115_v46, %v4028_v20  ;;  %v2117_v48 = vpop.f32.mrb[89].mxu0 }
 0x4f1   : > { %v2118_v49 = vadd.f32 %v2117_v48, %v4031_v21  ;;  %v2119_v50 = vpop.f32.mrb[90].mxu0  ;;  %2389 = vmatprep.mubr.bf16.mxu1 %v2177_v45 }
 0x4f2   : > { %v2120_v55 = vadd.f32 %v2119_v50, %v4028_v20  ;;  %v2121_v51 = vpop.f32.mrb[91].mxu0  ;;  %2390 = vmatmul.mubr.bf16.gmra.mrb[72].mxu1 %v2176_v44  ;;  %v2158_v56 = vmax.f32 %v2116_v47, 0.0 }
 0x4f3   : > { %v2122_v52 = vadd.f32 %v2121_v51, %v4031_v21  ;;  %v2159_v54 = vmax.f32 %v2118_v49, 0.0 }
 0x4f4   : > { %v2160_v53 = vmax.f32 %v2120_v55, 0.0 }
 0x4f5   : > { %v2161_v57 = vmax.f32 %v2122_v52, 0.0 }
 0x4f6   : > { %v2178_v58 = vpack.c.bf16 %v2160_v53, %v2158_v56 }
 0x4f7   : > { %v2179_v59 = vpack.c.bf16 %v2161_v57, %v2159_v54  ;;  %v2125_v60 = vpop.f32.mrb[92].mxu0 }
 0x4f8   : > { %v2126_v61 = vadd.f32 %v2125_v60, %v4028_v20  ;;  %v2127_v62 = vpop.f32.mrb[93].mxu0 }
 0x4f9   : > { %v2128_v63 = vadd.f32 %v2127_v62, %v4031_v21  ;;  %v2129_v0 = vpop.f32.mrb[94].mxu0  ;;  %2397 = vmatprep.mubr.bf16.mxu1 %v2179_v59 }
 0x4fa   : > { %v2130_v1 = vadd.f32 %v2129_v0, %v4028_v20  ;;  %v2131_v2 = vpop.f32.mrb[95].mxu0  ;;  %2398 = vmatmul.mubr.bf16.gmra.mrb[76].mxu1 %v2178_v58  ;;  %v2162_v4 = vmax.f32 %v2126_v61, 0.0  ;;  %v4069_v20 = vld [vmem:[%s4196_s14] ss:$0 sm:$0xff] }
 0x4fb   : > { %v2132_v3 = vadd.f32 %v2131_v2, %v4031_v21  ;;  %v2163_v6 = vmax.f32 %v2128_v63, 0.0 }
 0x4fc   : > { %v2164_v5 = vmax.f32 %v2130_v1, 0.0 }
 0x4fd   : > { %v2165_v7 = vmax.f32 %v2132_v3, 0.0 }
 0x4fe   : > { %v2180_v8 = vpack.c.bf16 %v2164_v5, %v2162_v4 }
 0x4ff   : > { %v2181_v9 = vpack.c.bf16 %v2165_v7, %v2163_v6 }
 0x501   : > { %2405 = vmatprep.mubr.bf16.mxu1 %v2181_v9 }
 0x502   : > { %2406 = vmatmul.mubr.bf16.gmra.mrb[80].mxu1 %v2180_v8 }
 0x59d   : > { %v2871_v10 = vpop.f32.mrb[96].mxu0 }
 0x59e   : > { %v2872_v11 = vpop.f32.mrb[97].mxu0 }
 0x59f   : > { %v2873_v16 = vadd.f32 %v2872_v11, %v2871_v10  ;;  %v2874_v12 = vpop.f32.mrb[98].mxu0 }
 0x5a0   : > { %v2875_v21 = vpop.f32.mrb[99].mxu0 }
 0x5a1   : > { %v2876_v17 = vadd.f32 %v2875_v21, %v2874_v12  ;;  %v2352_v13 = vadd.f32 %v2873_v16, %v4069_v20 }
 0x5a3   : > { %v2355_v14 = vadd.f32 %v2876_v17, %v4069_v20 }
 0x5a5   : > { %v2811_v15 = vpack.c.bf16 %v2355_v14, %v2352_v13  ;;  %v2877_v18 = vpop.f32.mrb[100].mxu0 }
 0x5a6   : > { %v2878_v22 = vpop.f32.mrb[101].mxu0 }
 0x5a7   : > { %2812 = vst [vmem:[%s4075_s13] sm:$0xff] %v2811_v15   ;;  %v2879_v19 = vadd.f32 %v2878_v22, %v2877_v18  ;;  %v2880_v23 = vpop.f32.mrb[102].mxu0 }
 0x5a8   : > { %v2881_v24 = vpop.f32.mrb[103].mxu0 }
 0x5a9   : > { %v2882_v25 = vadd.f32 %v2881_v24, %v2880_v23  ;;  %v2360_v26 = vadd.f32 %v2879_v19, %v4069_v20 }
 0x5ab   : > { %v2363_v28 = vadd.f32 %v2882_v25, %v4069_v20 }
 0x5ad   : > { %v2816_v32 = vpack.c.bf16 %v2363_v28, %v2360_v26  ;;  %v2883_v30 = vpop.f32.mrb[104].mxu0 }
 0x5ae   : > { %v2884_v33 = vpop.f32.mrb[105].mxu0 }
 0x5af   : > { %2848 = vst [vmem:[%s4075_s13 + $0x8] sm:$0xff] %v2816_v32   ;;  %v2885_v31 = vadd.f32 %v2884_v33, %v2883_v30  ;;  %v2886_v34 = vpop.f32.mrb[106].mxu0 }
 0x5b0   : > { %v2887_v35 = vpop.f32.mrb[107].mxu0 }
 0x5b1   : > { %v2888_v36 = vadd.f32 %v2887_v35, %v2886_v34  ;;  %v2368_v27 = vadd.f32 %v2885_v31, %v4069_v20 }
 0x5b3   : > { %v2371_v37 = vadd.f32 %v2888_v36, %v4069_v20 }
 0x5b5   : > { %v2821_v38 = vpack.c.bf16 %v2371_v37, %v2368_v27  ;;  %v2889_v29 = vpop.f32.mrb[64].mxu1 }
 0x5b6   : > { %v2890_v39 = vpop.f32.mrb[65].mxu1 }
 0x5b7   : > { %2849 = vst [vmem:[%s4075_s13 + $0x10] sm:$0xff] %v2821_v38   ;;  %v2891_v40 = vadd.f32 %v2890_v39, %v2889_v29  ;;  %v2892_v41 = vpop.f32.mrb[66].mxu1 }
 0x5b8   : > { %v2893_v42 = vpop.f32.mrb[67].mxu1 }
 0x5b9   : > { %v2894_v43 = vadd.f32 %v2893_v42, %v2892_v41  ;;  %v2376_v44 = vadd.f32 %v2891_v40, %v4069_v20 }
 0x5bb   : > { %v2379_v45 = vadd.f32 %v2894_v43, %v4069_v20 }
 0x5bd   : > { %v2826_v46 = vpack.c.bf16 %v2379_v45, %v2376_v44  ;;  %v2895_v47 = vpop.f32.mrb[68].mxu1 }
 0x5be   : > { %v2896_v48 = vpop.f32.mrb[69].mxu1 }
 0x5bf   : > { %2850 = vst [vmem:[%s4075_s13 + $0x18] sm:$0xff] %v2826_v46   ;;  %v2897_v49 = vadd.f32 %v2896_v48, %v2895_v47  ;;  %v2898_v50 = vpop.f32.mrb[70].mxu1 }
 0x5c0   : > { %v2899_v55 = vpop.f32.mrb[71].mxu1 }
 0x5c1   : > { %v2900_v51 = vadd.f32 %v2899_v55, %v2898_v50  ;;  %v2384_v52 = vadd.f32 %v2897_v49, %v4069_v20 }
 0x5c3   : > { %v2387_v56 = vadd.f32 %v2900_v51, %v4069_v20 }
 0x5c5   : > { %v2831_v53 = vpack.c.bf16 %v2387_v56, %v2384_v52  ;;  %v2901_v54 = vpop.f32.mrb[72].mxu1 }
 0x5c6   : > { %v2902_v57 = vpop.f32.mrb[73].mxu1 }
 0x5c7   : > { %2851 = vst [vmem:[%s4075_s13 + $0x20] sm:$0xff] %v2831_v53   ;;  %v2903_v58 = vadd.f32 %v2902_v57, %v2901_v54  ;;  %v2904_v59 = vpop.f32.mrb[74].mxu1 }
 0x5c8   : > { %v2905_v60 = vpop.f32.mrb[75].mxu1 }
 0x5c9   : > { %v2906_v61 = vadd.f32 %v2905_v60, %v2904_v59  ;;  %v2392_v62 = vadd.f32 %v2903_v58, %v4069_v20 }
 0x5cb   : > { %v2395_v63 = vadd.f32 %v2906_v61, %v4069_v20 }
 0x5cd   : > { %v2836_v0 = vpack.c.bf16 %v2395_v63, %v2392_v62  ;;  %v2907_v1 = vpop.f32.mrb[76].mxu1 }
 0x5ce   : > { %v2908_v2 = vpop.f32.mrb[77].mxu1 }
 0x5cf   : > { %2852 = vst [vmem:[%s4075_s13 + $0x28] sm:$0xff] %v2836_v0   ;;  %v2909_v3 = vadd.f32 %v2908_v2, %v2907_v1  ;;  %v2910_v4 = vpop.f32.mrb[78].mxu1 }
 0x5d0   : > { %v2911_v5 = vpop.f32.mrb[79].mxu1 }
 0x5d1   : > { %v2912_v6 = vadd.f32 %v2911_v5, %v2910_v4  ;;  %v2400_v7 = vadd.f32 %v2909_v3, %v4069_v20 }
 0x5d3   : > { %v2403_v8 = vadd.f32 %v2912_v6, %v4069_v20 }
 0x5d5   : > { %v2841_v9 = vpack.c.bf16 %v2403_v8, %v2400_v7  ;;  %v2913_v10 = vpop.f32.mrb[80].mxu1 }
 0x5d6   : > { %v2914_v11 = vpop.f32.mrb[81].mxu1 }
 0x5d7   : > { %2853 = vst [vmem:[%s4075_s13 + $0x30] sm:$0xff] %v2841_v9   ;;  %v2915_v16 = vadd.f32 %v2914_v11, %v2913_v10  ;;  %v2916_v12 = vpop.f32.mrb[82].mxu1 }
 0x5d8   : > { %v2917_v21 = vpop.f32.mrb[83].mxu1 }
 0x5d9   : > { %v2918_v17 = vadd.f32 %v2917_v21, %v2916_v12  ;;  %v2408_v13 = vadd.f32 %v2915_v16, %v4069_v20 }
 0x5db   : > { %v2411_v14 = vadd.f32 %v2918_v17, %v4069_v20 }
 0x5dd   : > { %v2846_v15 = vpack.c.bf16 %v2411_v14, %v2408_v13 }
 0x5df   : > { %2854 = vst [vmem:[%s4075_s13 + $0x38] sm:$0xff] %v2846_v15  }
 0x5e0   : > { %3319 = shalt.err (!%p3316_p9)
}
 0x5e1   : > { %s3320_s22 = scalar_lea.hbm %s4103_s19, 1024  ;;  %s3324_s14 = scalar_lea.hbm %s4198_s18, 4096 }
 0x5e2   : > { %p3321_p2 = scmp.ne.s32.totalorder %s4103_s19, %s3320_s22  ;;  %p3325_p5 = scmp.lt.u32.totalorder %s4103_s19, %s4198_s18 }
 0x5e3   : > { %p3326_p10 = scmp.lt.u32.totalorder %s3324_s14, %s3320_s22  ;;  %p3328_p4 = scmp.lt.u32.totalorder %s3320_s22, %s4103_s19 }
 0x5e4   : > { %p3322_p3 = pnand %p3321_p2, %p4199_p7 }
 0x5e5   : > { %p3327_p12 = por %p3326_p10, %p3325_p5 }
 0x5e6   : > { %p3323_p0 = pneg %p3322_p3 }
 0x5e7   : > { %p3329_p8 = por %p3328_p4, %p3327_p12 }
 0x5e9   : > { %p3330_p11 = pnand %p3329_p8, %p3323_p0 }
 0x5eb   : > { %3333 = shalt.err (!%p3330_p11)
}
 0x5ec   : > { %s3387_s20 = smov 64   ;;  %s3388_s16 = smov 4  }
 0x5ed   : > { %2947 = dma.vmem_to_hbm [thread:$0]  (%p4199_p7), %s4105_s23, 1024, %s4103_s19, %s4110_s21, %s3387_s20, %s3387_s20, %s3388_s16  }
 0x5ee PF: > { %s4200_s28 = sld [smem:[#allocation14_spill]]  ;;  %s4201_s29 = sld [smem:[#allocation12_spill]] }
 0x5ef   : > { %s4202_s24 = sld [smem:[#allocation18_spill]] }
 0x5f4   : > { %p2969_p13 = scmp.ge.s32.totalorder %s4200_s28, 2  ;;  %s2523_s15 = sand.u32 1, %s4201_s29  }
 0x5f5   : > { %p4203_p1 = scmp.ne.s32.totalorder %s4202_s24, 0  ;;  %s2524_s27 = scalar_lea.sflag [#allocation4], %s2523_s15 }
 0x5f7   : > { %p2960_p6 = pnand %p2969_p13, %p4203_p1 }
 0x5f9   : > { %3359 = dma.done.wait (!%p2960_p6), %s2524_s27, 1024  }
 0x5fa   : > { %3361 = vsyncadd (!%p2960_p6), %s2524_s27, 4294966272  ;;  %s4204_s28 = sld [smem:[#allocation15_spill]]  ;;  %s4205_s22 = sld [smem:[#allocation13_spill]] }
 0x5fb   : > { %s4206_s27 = sld [smem:[#allocation16_spill]]  ;;  %s4207_s25 = smov %s3368_s26 }
 0x600   : > { %p25_p9 = scmp.ge.s32.totalorder %s4204_s28, 6   ;;  %s4208_s26 = smov %s4205_s22 }
 0x602   :  { %27 = sbr.rel (!%p25_p9) target bundleno = 8 (0x8), region = 120 }
 0x609   :  { %2529 = vsyncpa [#allocation3], 1 }
 0x60a   :  { %2531 = vsyncpa [#allocation3 + $0x1], 1 }
 0x60b   :  { %2532 = vsyncpa [#allocation6], 1 }
 0x60c   :  { %2533 = vsyncpa [#allocation4], 1 }
 0x60d   :  { %2535 = vsyncpa [#allocation4 + $0x1], 1 }

</bundles_post_ra>
